<compile_context>
chip_gen: v7x
topology: tpu7x:2x2x1
jax: 0.10.0
libtpu: 0.0.40
codegen_flags: <defaults>
</compile_context>

<pallas_src>
import functools

import jax
import jax.numpy as jnp
import numpy as np
from jax import lax
from jax.experimental import pallas as pl
from jax.experimental.pallas import tpu as pltpu


def _round_up(x, m):
    return (x + m - 1) // m * m


def route_lstm_kernel(x_ref, wih_t_ref, whh_t_ref, b_ref, wfc_t_ref, bfc_ref,
                      out_ref, h_ref, c_ref, gx_ref, hall_ref):
    """One grid step = one (batch tile, time block) of the LSTM recurrence.

    Grid = (n_batch_tiles, n_time_blocks); axis 0 "parallel", axis 1 "arbitrary".

    Shapes (all padded):
      x_ref      (Bt, F)        mm_dtype   time-invariant LSTM input
      wih_t_ref  (F, 4*Hp)      mm_dtype
      whh_t_ref  (Hp, 4*Hp)     mm_dtype
      b_ref      (1, 4*Hp)      f32        b_ih + b_hh, gate-padded
      wfc_t_ref  (Hp, Vp)       mm_dtype
      bfc_ref    (1, Vp)        f32
      out_ref    (Tt*Bt, Vp)    f32        rows ordered (t_local, b_local)
      h_ref/c_ref (Bt, Hp)      f32        carried across time blocks
      gx_ref     (Bt, 4*Hp)     f32        carried input+bias gate contribution
      hall_ref   (Tt*Bt, Hp)    f32        per-block h history
    """
    Bt, Hp = h_ref.shape
    Tt = hall_ref.shape[0] // Bt
    mm_dtype = whh_t_ref.dtype

    @pl.when(pl.program_id(1) == 0)          # first time block of this batch tile
    def _init():
        h_ref[...] = jnp.zeros_like(h_ref)
        c_ref[...] = jnp.zeros_like(c_ref)
        # Input contribution to the gates is time-invariant: compute once per
        # batch tile and carry it across all time blocks.
        gx_ref[...] = (jnp.dot(x_ref[...], wih_t_ref[...],
                               preferred_element_type=jnp.float32)
                       + b_ref[...])

    gx = gx_ref[...]

    def step(t, carry):
        h, c = carry
        gates = gx + jnp.dot(h.astype(mm_dtype), whh_t_ref[...],
                             preferred_element_type=jnp.float32)
        # Gate order is (i, f, o, g): one sigmoid over a contiguous 3*Hp slice,
        # one tanh over the last Hp slice (all 128-lane aligned, Hp % 128 == 0).
        s = jax.nn.sigmoid(gates[:, :3 * Hp])
        i = s[:, 0 * Hp:1 * Hp]
        f = s[:, 1 * Hp:2 * Hp]
        o = s[:, 2 * Hp:3 * Hp]
        g = jnp.tanh(gates[:, 3 * Hp:4 * Hp])
        c = f * c + i * g
        h = o * jnp.tanh(c)
        row = pl.multiple_of(t * Bt, 8)
        hall_ref[pl.ds(row, Bt), :] = h          # sublane-aligned, unmasked
        return h, c

    # Partial unroll for long blocks: keeps LLO visibility without code bloat.
    unroll = Tt if Tt <= 8 else 8
    h_fin, c_fin = lax.fori_loop(0, Tt, step, (h_ref[...], c_ref[...]),
                                 unroll=unroll)
    h_ref[...] = h_fin
    c_ref[...] = c_fin

    # Fused fc projection: one (Tt*Bt, Hp) x (Hp, Vp) matmul and one lane-dense
    # store for the whole time block.
    out_ref[...] = (jnp.dot(hall_ref[...].astype(mm_dtype), wfc_t_ref[...],
                            preferred_element_type=jnp.float32)
                    + bfc_ref[...])


def prepare_inference_params(params, mm_dtype=jnp.float32):
    """One-time weight repack (outside jit): transpose, pad H per gate and V to
    128-lane multiples, reorder gates (i,f,g,o)->(i,f,o,g), cast matmul
    operands to mm_dtype (bf16 is the MXU fast path on v5e/v6e/v7x alike)."""
    H = params["w_hh"].shape[1]
    V = params["w_fc"].shape[0]
    F = params["w_ih"].shape[1]          # 72 = 32 + 32 + 8
    Hp = _round_up(H, 128)
    Vp = _round_up(V, 128)

    # PyTorch gate order is (i, f, g, o); repack to (i, f, o, g).
    perm = jnp.array([0, 1, 3, 2])

    w_ih = params["w_ih"].reshape(4, H, F)[perm]
    w_ih_p = jnp.zeros((4, Hp, F), jnp.float32).at[:, :H, :].set(w_ih)
    w_ih_t = jnp.transpose(w_ih_p.reshape(4 * Hp, F))            # (F, 4*Hp)

    w_hh = params["w_hh"].reshape(4, H, H)[perm]
    w_hh_p = jnp.zeros((4, Hp, Hp), jnp.float32).at[:, :H, :H].set(w_hh)
    w_hh_t = jnp.transpose(w_hh_p.reshape(4 * Hp, Hp))           # (Hp, 4*Hp)

    b = (params["b_ih"] + params["b_hh"]).reshape(4, H)[perm]
    b_p = jnp.zeros((4, Hp), jnp.float32).at[:, :H].set(b).reshape(1, 4 * Hp)

    w_fc_t = jnp.zeros((Hp, Vp), jnp.float32).at[:H, :V].set(params["w_fc"].T)
    b_fc = jnp.zeros((1, Vp), jnp.float32).at[0, :V].set(params["b_fc"])

    return {
        "port_emb": params["port_emb"].astype(jnp.float32),
        "ship_emb": params["ship_emb"].astype(jnp.float32),
        "w_ih_t": w_ih_t.astype(mm_dtype),
        "w_hh_t": w_hh_t.astype(mm_dtype),
        "b": b_p,                                   # biases stay f32
        "w_fc_t": w_fc_t.astype(mm_dtype),
        "b_fc": b_fc,
    }


@functools.partial(jax.jit,
                   static_argnames=("target_len", "time_block", "batch_tile"))
def route_lstm_forward(ship_type, first_port, last_port, target_len, prepared,
                       time_block=32, batch_tile=8):
    """RouteLSTM forward.  time_block: size so Tt*batch_tile >= 128 (v5e) /
    256 (v6e/v7x) and the out/hall blocks fit the 48 MiB VMEM budget (v7x)."""
    mm_dtype = prepared["w_ih_t"].dtype
    V = prepared["port_emb"].shape[0]               # fc output size == port vocab
    Hp = prepared["w_hh_t"].shape[0]
    Vp = prepared["w_fc_t"].shape[1]

    # Embedding gathers + concat (glue, plain JAX).
    first = prepared["port_emb"][first_port]        # (B, 32)
    last = prepared["port_emb"][last_port]          # (B, 32)
    ship = prepared["ship_emb"][ship_type]          # (B, 8)
    x = jnp.concatenate([first, last, ship], axis=1)   # (B, 72)
    B, F = x.shape

    Bt = _round_up(batch_tile, 8)                   # batch tile (sublane width)
    Bp = _round_up(B, Bt)
    n_bt = Bp // Bt
    x_p = jnp.zeros((Bp, F), jnp.float32).at[:B].set(x).astype(mm_dtype)

    Tt = max(1, min(time_block, target_len))        # avoid wasted padded steps
    n_tb = pl.cdiv(target_len, Tt)
    T_pad = n_tb * Tt

    # Output rows are ordered (batch_tile, time, batch_local); one lane-dense
    # (Tt*Bt, Vp) block per grid step.
    out2d = pl.pallas_call(
        route_lstm_kernel,
        out_shape=jax.ShapeDtypeStruct((n_bt * T_pad * Bt, Vp), jnp.float32),
        grid=(n_bt, n_tb),
        in_specs=[
            # Time-invariant inputs: single-buffer (no dead 2nd pipeline buffer).
            pl.BlockSpec((Bt, F), lambda bt, tb: (bt, 0),
                         pipeline_mode=pl.Buffered(1)),
            pl.BlockSpec((F, 4 * Hp), lambda bt, tb: (0, 0),
                         pipeline_mode=pl.Buffered(1)),
            pl.BlockSpec((Hp, 4 * Hp), lambda bt, tb: (0, 0),
                         pipeline_mode=pl.Buffered(1)),
            pl.BlockSpec((1, 4 * Hp), lambda bt, tb: (0, 0),
                         pipeline_mode=pl.Buffered(1)),
            pl.BlockSpec((Hp, Vp), lambda bt, tb: (0, 0),
                         pipeline_mode=pl.Buffered(1)),
            pl.BlockSpec((1, Vp), lambda bt, tb: (0, 0),
                         pipeline_mode=pl.Buffered(1)),
        ],
        out_specs=pl.BlockSpec((Tt * Bt, Vp),
                               lambda bt, tb: (bt * n_tb + tb, 0)),
        scratch_shapes=[
            pltpu.VMEM((Bt, Hp), jnp.float32),        # h carry
            pltpu.VMEM((Bt, Hp), jnp.float32),        # c carry
            pltpu.VMEM((Bt, 4 * Hp), jnp.float32),    # gx carry (input+bias)
            pltpu.VMEM((Tt * Bt, Hp), jnp.float32),   # per-block h history
        ],
        compiler_params=pltpu.CompilerParams(
            # batch tiles across v7x's 2 TCs; time recurrence is serial.
            dimension_semantics=("parallel", "arbitrary"),
            vmem_limit_bytes=48 * 1024 * 1024,         # v7x-safe budget
        ),
    )(x_p, prepared["w_ih_t"], prepared["w_hh_t"], prepared["b"],
      prepared["w_fc_t"], prepared["b_fc"])

    # (n_bt*T_pad*Bt, Vp) rows are (bt, t, b_local); slice padding, reorder to
    # batch-first on the small sliced output.
    out = out2d.reshape(n_bt, T_pad, Bt, Vp)[:, :target_len, :, :V]
    out = jnp.transpose(out, (0, 2, 1, 3)).reshape(n_bt * Bt, target_len, V)
    return out[:B]                                    # (B, T, V), batch_first


def reference_forward(ship_type, first_port, last_port, target_len, params):
    """Pure-JAX reference matching PyTorch nn.LSTM semantics."""
    first_embed = params["port_emb"][first_port]
    last_embed = params["port_emb"][last_port]
    ship_embed = params["ship_emb"][ship_type]
    x = jnp.concatenate([first_embed, last_embed, ship_embed], axis=1)
    H = params["w_hh"].shape[1]
    B = x.shape[0]
    h = jnp.zeros((B, H), jnp.float32)
    c = jnp.zeros((B, H), jnp.float32)
    gx = x @ params["w_ih"].T + params["b_ih"] + params["b_hh"]
    outs = []
    for _ in range(target_len):
        gates = gx + h @ params["w_hh"].T
        i = jax.nn.sigmoid(gates[:, :H])
        f = jax.nn.sigmoid(gates[:, H:2 * H])
        g = jnp.tanh(gates[:, 2 * H:3 * H])
        o = jax.nn.sigmoid(gates[:, 3 * H:4 * H])
        c = f * c + i * g
        h = o * jnp.tanh(c)
        outs.append(h @ params["w_fc"].T + params["b_fc"])
    return jnp.stack(outs, axis=1)


def init_params(key, port_vocab_size, ship_vocab_size, hidden_dim):
    ks = jax.random.split(key, 8)
    s = 1.0 / jnp.sqrt(hidden_dim)
    return {
        "port_emb": jax.random.normal(ks[0], (port_vocab_size, 32), jnp.float32),
        "ship_emb": jax.random.normal(ks[1], (ship_vocab_size, 8), jnp.float32),
        "w_ih": jax.random.uniform(ks[2], (4 * hidden_dim, 72), jnp.float32, -s, s),
        "w_hh": jax.random.uniform(ks[3], (4 * hidden_dim, hidden_dim), jnp.float32, -s, s),
        "b_ih": jax.random.uniform(ks[4], (4 * hidden_dim,), jnp.float32, -s, s),
        "b_hh": jax.random.uniform(ks[5], (4 * hidden_dim,), jnp.float32, -s, s),
        "w_fc": jax.random.uniform(ks[6], (port_vocab_size, hidden_dim), jnp.float32, -s, s),
        "b_fc": jax.random.uniform(ks[7], (port_vocab_size,), jnp.float32, -s, s),
    }


if __name__ == "__main__":
    # Small, deterministic synthetic config (no checkpoint loading).
    port_vocab_size = 16
    ship_vocab_size = 4
    hidden_dim = 32
    batch = 2

    key = jax.random.PRNGKey(0)
    pkey, k_ship, k_first, k_last = jax.random.split(key, 4)
    params = init_params(pkey, port_vocab_size, ship_vocab_size, hidden_dim)

    ship_type = jax.random.randint(k_ship, (batch,), 0, ship_vocab_size, jnp.int32)
    first_port = jax.random.randint(k_first, (batch,), 0, port_vocab_size, jnp.int32)
    last_port = jax.random.randint(k_last, (batch,), 0, port_vocab_size, jnp.int32)

    prep_f32 = prepare_inference_params(params, mm_dtype=jnp.float32)
    prep_bf16 = prepare_inference_params(params, mm_dtype=jnp.bfloat16)

    # --- Short sequence: single time block, fully-unrolled step loop. ---
    T = 8
    ref = reference_forward(ship_type, first_port, last_port, T, params)

    out_f32 = jax.block_until_ready(
        route_lstm_forward(ship_type, first_port, last_port, T, prep_f32,
                           time_block=32))
    assert out_f32.shape == (batch, T, port_vocab_size)
    np.testing.assert_allclose(np.asarray(out_f32), np.asarray(ref),
                               rtol=1e-4, atol=1e-4)

    # bf16 matmul path (MXU fast path on all of v5e/v6e/v7x; f32 gate math).
    # Note: bf16 recurrence error compounds with sequence length; tolerance is
    # calibrated for short T here.
    out_bf16 = jax.block_until_ready(
        route_lstm_forward(ship_type, first_port, last_port, T, prep_bf16,
                           time_block=32))
    np.testing.assert_allclose(np.asarray(out_bf16), np.asarray(ref),
                               rtol=5e-2, atol=5e-2)

    # --- Longer sequence: multiple time blocks, tail padding, partial unroll. ---
    T2 = 40
    ref2 = reference_forward(ship_type, first_port, last_port, T2, params)
    out2 = jax.block_until_ready(
        route_lstm_forward(ship_type, first_port, last_port, T2, prep_f32,
                           time_block=16))
    assert out2.shape == (batch, T2, port_vocab_size)
    np.testing.assert_allclose(np.asarray(out2), np.asarray(ref2),
                               rtol=1e-4, atol=1e-4)

    print("KERNEL_OK")
</pallas_src>

<mosaic_0001>
module attributes {stable_mosaic.version = 11 : i64} {
  func.func @route_lstm_kernel(%arg0: i32, %arg1: i32, %arg2: memref<8x72xf32, #tpu.memory_space<vmem>>, %arg3: memref<72x512xf32, #tpu.memory_space<vmem>>, %arg4: memref<128x512xf32, #tpu.memory_space<vmem>>, %arg5: memref<1x512xf32, #tpu.memory_space<vmem>>, %arg6: memref<128x128xf32, #tpu.memory_space<vmem>>, %arg7: memref<1x128xf32, #tpu.memory_space<vmem>>, %arg8: memref<64x128xf32, #tpu.memory_space<vmem>>, %arg9: memref<8x128xf32, #tpu.memory_space<vmem>>, %arg10: memref<8x128xf32, #tpu.memory_space<vmem>>, %arg11: memref<8x512xf32, #tpu.memory_space<vmem>>, %arg12: memref<64x128xf32, #tpu.memory_space<vmem>>) attributes {dimension_semantics = [#tpu.dimension_semantics<parallel>, #tpu.dimension_semantics<arbitrary>], iteration_bounds = array<i64: 1, 1>, scalar_prefetch = 0 : i64, scratch_operands = 4 : i64, tpu.core_type = #tpu.core_type<tc>, window_params = [{pipeline_mode = #tpu.pipeline_mode<synchronous>, transform_indices = @transform_0, window_bounds = array<i64: 8, 72>}, {pipeline_mode = #tpu.pipeline_mode<synchronous>, transform_indices = @transform_1, window_bounds = array<i64: 72, 512>}, {pipeline_mode = #tpu.pipeline_mode<synchronous>, transform_indices = @transform_2, window_bounds = array<i64: 128, 512>}, {pipeline_mode = #tpu.pipeline_mode<synchronous>, transform_indices = @transform_3, window_bounds = array<i64: 1, 512>}, {pipeline_mode = #tpu.pipeline_mode<synchronous>, transform_indices = @transform_4, window_bounds = array<i64: 128, 128>}, {pipeline_mode = #tpu.pipeline_mode<synchronous>, transform_indices = @transform_5, window_bounds = array<i64: 1, 128>}, {transform_indices = @transform_6, window_bounds = array<i64: 64, 128>}]} {
    %c0_i32 = arith.constant 0 : i32
    %0 = arith.cmpi eq, %arg1, %c0_i32 : i32
    %1 = arith.extui %0 : i1 to i32
    %c0_i32_0 = arith.constant 0 : i32
    %2 = arith.cmpi ne, %1, %c0_i32_0 : i32
    scf.if %2 {
      %cst_67 = arith.constant 0.000000e+00 : f32
      %199 = vector.broadcast %cst_67 : f32 to vector<8x128xf32>
      %c0_68 = arith.constant 0 : index
      %c0_69 = arith.constant 0 : index
      %200 = vector.load %arg9[%c0_68, %c0_69] : memref<8x128xf32, #tpu.memory_space<vmem>>, vector<8x128xf32>
      tpu.vector_store %arg9[%c0_68, %c0_69], %199 {strides = array<i32>} : memref<8x128xf32, #tpu.memory_space<vmem>>, vector<8x128xf32>,
      %cst_70 = arith.constant 0.000000e+00 : f32
      %201 = vector.broadcast %cst_70 : f32 to vector<8x128xf32>
      %c0_71 = arith.constant 0 : index
      %c0_72 = arith.constant 0 : index
      %202 = vector.load %arg10[%c0_71, %c0_72] : memref<8x128xf32, #tpu.memory_space<vmem>>, vector<8x128xf32>
      tpu.vector_store %arg10[%c0_71, %c0_72], %201 {strides = array<i32>} : memref<8x128xf32, #tpu.memory_space<vmem>>, vector<8x128xf32>,
      %c0_73 = arith.constant 0 : index
      %c0_74 = arith.constant 0 : index
      %203 = vector.load %arg2[%c0_73, %c0_74] : memref<8x72xf32, #tpu.memory_space<vmem>>, vector<8x72xf32>
      %c0_75 = arith.constant 0 : index
      %c0_76 = arith.constant 0 : index
      %204 = vector.load %arg3[%c0_75, %c0_76] : memref<72x512xf32, #tpu.memory_space<vmem>>, vector<72x512xf32>
      %cst_77 = arith.constant dense<0.000000e+00> : vector<8x512xf32>
      %205 = tpu.matmul %203, %204, %cst_77 {dimension_numbers = #tpu.dot_dimension_numbers<[1], [0], [0], [1], [0, 0, 1, 1], [], []>} : vector<8x72xf32>, vector<72x512xf32>, vector<8x512xf32> -> vector<8x512xf32>
      %c0_78 = arith.constant 0 : index
      %c0_79 = arith.constant 0 : index
      %206 = vector.load %arg5[%c0_78, %c0_79] : memref<1x512xf32, #tpu.memory_space<vmem>>, vector<1x512xf32>
      %207 = vector.broadcast %206 : vector<1x512xf32> to vector<8x512xf32>
      %208 = arith.addf %205, %207 : vector<8x512xf32>
      %c0_80 = arith.constant 0 : index
      %c0_81 = arith.constant 0 : index
      %209 = vector.load %arg11[%c0_80, %c0_81] : memref<8x512xf32, #tpu.memory_space<vmem>>, vector<8x512xf32>
      tpu.vector_store %arg11[%c0_80, %c0_81], %208 {strides = array<i32>} : memref<8x512xf32, #tpu.memory_space<vmem>>, vector<8x512xf32>,
    } else {
    }
    %c0 = arith.constant 0 : index
    %c0_1 = arith.constant 0 : index
    %3 = vector.load %arg11[%c0, %c0_1] : memref<8x512xf32, #tpu.memory_space<vmem>>, vector<8x512xf32>
    %c0_2 = arith.constant 0 : index
    %c0_3 = arith.constant 0 : index
    %4 = vector.load %arg9[%c0_2, %c0_3] : memref<8x128xf32, #tpu.memory_space<vmem>>, vector<8x128xf32>
    %c0_4 = arith.constant 0 : index
    %c0_5 = arith.constant 0 : index
    %5 = vector.load %arg10[%c0_4, %c0_5] : memref<8x128xf32, #tpu.memory_space<vmem>>, vector<8x128xf32>
    %c0_i32_6 = arith.constant 0 : i32
    %c0_7 = arith.constant 0 : index
    %c0_8 = arith.constant 0 : index
    %6 = vector.load %arg4[%c0_7, %c0_8] : memref<128x512xf32, #tpu.memory_space<vmem>>, vector<128x512xf32>
    %cst = arith.constant dense<0.000000e+00> : vector<8x512xf32>
    %7 = tpu.matmul %4, %6, %cst {dimension_numbers = #tpu.dot_dimension_numbers<[1], [0], [0], [1], [0, 0, 1, 1], [], []>} : vector<8x128xf32>, vector<128x512xf32>, vector<8x512xf32> -> vector<8x512xf32>
    %8 = arith.addf %3, %7 : vector<8x512xf32>
    %9 = vector.extract_strided_slice %8 {offsets = [0, 0], sizes = [8, 384], strides = [1, 1]} : vector<8x512xf32> to vector<8x384xf32>
    %10 = arith.negf %9 : vector<8x384xf32>
    %11 = math.exp %10 : vector<8x384xf32>
    %cst_9 = arith.constant 1.000000e+00 : f32
    %12 = vector.broadcast %cst_9 : f32 to vector<8x384xf32>
    %13 = arith.addf %12, %11 : vector<8x384xf32>
    %14 = arith.divf %12, %13 : vector<8x384xf32>
    %15 = vector.extract_strided_slice %14 {offsets = [0, 0], sizes = [8, 128], strides = [1, 1]} : vector<8x384xf32> to vector<8x128xf32>
    %16 = vector.extract_strided_slice %14 {offsets = [0, 128], sizes = [8, 128], strides = [1, 1]} : vector<8x384xf32> to vector<8x128xf32>
    %17 = vector.extract_strided_slice %14 {offsets = [0, 256], sizes = [8, 128], strides = [1, 1]} : vector<8x384xf32> to vector<8x128xf32>
    %18 = vector.extract_strided_slice %8 {offsets = [0, 384], sizes = [8, 128], strides = [1, 1]} : vector<8x512xf32> to vector<8x128xf32>
    %19 = math.tanh %18 : vector<8x128xf32>
    %20 = arith.mulf %16, %5 : vector<8x128xf32>
    %21 = arith.mulf %15, %19 : vector<8x128xf32>
    %22 = arith.addf %20, %21 : vector<8x128xf32>
    %23 = math.tanh %22 : vector<8x128xf32>
    %24 = arith.mulf %17, %23 : vector<8x128xf32>
    %c8_i32 = arith.constant 8 : i32
    %25 = arith.muli %c0_i32_6, %c8_i32 : i32
    %26 = tpu.assume_multiple %25, 8 : i32
    %27 = arith.index_cast %26 : i32 to index
    %c0_10 = arith.constant 0 : index
    %28 = vector.load %arg12[%27, %c0_10] : memref<64x128xf32, #tpu.memory_space<vmem>>, vector<8x128xf32>
    tpu.vector_store %arg12[%27, %c0_10], %24 {strides = array<i32>} : memref<64x128xf32, #tpu.memory_space<vmem>>, vector<8x128xf32>,
    %c1_i32 = arith.constant 1 : i32
    %c0_11 = arith.constant 0 : index
    %c0_12 = arith.constant 0 : index
    %29 = vector.load %arg4[%c0_11, %c0_12] : memref<128x512xf32, #tpu.memory_space<vmem>>, vector<128x512xf32>
    %cst_13 = arith.constant dense<0.000000e+00> : vector<8x512xf32>
    %30 = tpu.matmul %24, %29, %cst_13 {dimension_numbers = #tpu.dot_dimension_numbers<[1], [0], [0], [1], [0, 0, 1, 1], [], []>} : vector<8x128xf32>, vector<128x512xf32>, vector<8x512xf32> -> vector<8x512xf32>
    %31 = arith.addf %3, %30 : vector<8x512xf32>
    %32 = vector.extract_strided_slice %31 {offsets = [0, 0], sizes = [8, 384], strides = [1, 1]} : vector<8x512xf32> to vector<8x384xf32>
    %33 = arith.negf %32 : vector<8x384xf32>
    %34 = math.exp %33 : vector<8x384xf32>
    %cst_14 = arith.constant 1.000000e+00 : f32
    %35 = vector.broadcast %cst_14 : f32 to vector<8x384xf32>
    %36 = arith.addf %35, %34 : vector<8x384xf32>
    %37 = arith.divf %35, %36 : vector<8x384xf32>
    %38 = vector.extract_strided_slice %37 {offsets = [0, 0], sizes = [8, 128], strides = [1, 1]} : vector<8x384xf32> to vector<8x128xf32>
    %39 = vector.extract_strided_slice %37 {offsets = [0, 128], sizes = [8, 128], strides = [1, 1]} : vector<8x384xf32> to vector<8x128xf32>
    %40 = vector.extract_strided_slice %37 {offsets = [0, 256], sizes = [8, 128], strides = [1, 1]} : vector<8x384xf32> to vector<8x128xf32>
    %41 = vector.extract_strided_slice %31 {offsets = [0, 384], sizes = [8, 128], strides = [1, 1]} : vector<8x512xf32> to vector<8x128xf32>
    %42 = math.tanh %41 : vector<8x128xf32>
    %43 = arith.mulf %39, %22 : vector<8x128xf32>
    %44 = arith.mulf %38, %42 : vector<8x128xf32>
    %45 = arith.addf %43, %44 : vector<8x128xf32>
    %46 = math.tanh %45 : vector<8x128xf32>
    %47 = arith.mulf %40, %46 : vector<8x128xf32>
    %c8_i32_15 = arith.constant 8 : i32
    %48 = arith.muli %c1_i32, %c8_i32_15 : i32
    %49 = tpu.assume_multiple %48, 8 : i32
    %50 = arith.index_cast %49 : i32 to index
    %c0_16 = arith.constant 0 : index
    %51 = vector.load %arg12[%50, %c0_16] : memref<64x128xf32, #tpu.memory_space<vmem>>, vector<8x128xf32>
    tpu.vector_store %arg12[%50, %c0_16], %47 {strides = array<i32>} : memref<64x128xf32, #tpu.memory_space<vmem>>, vector<8x128xf32>,
    %c2_i32 = arith.constant 2 : i32
    %c0_17 = arith.constant 0 : index
    %c0_18 = arith.constant 0 : index
    %52 = vector.load %arg4[%c0_17, %c0_18] : memref<128x512xf32, #tpu.memory_space<vmem>>, vector<128x512xf32>
    %cst_19 = arith.constant dense<0.000000e+00> : vector<8x512xf32>
    %53 = tpu.matmul %47, %52, %cst_19 {dimension_numbers = #tpu.dot_dimension_numbers<[1], [0], [0], [1], [0, 0, 1, 1], [], []>} : vector<8x128xf32>, vector<128x512xf32>, vector<8x512xf32> -> vector<8x512xf32>
    %54 = arith.addf %3, %53 : vector<8x512xf32>
    %55 = vector.extract_strided_slice %54 {offsets = [0, 0], sizes = [8, 384], strides = [1, 1]} : vector<8x512xf32> to vector<8x384xf32>
    %56 = arith.negf %55 : vector<8x384xf32>
    %57 = math.exp %56 : vector<8x384xf32>
    %cst_20 = arith.constant 1.000000e+00 : f32
    %58 = vector.broadcast %cst_20 : f32 to vector<8x384xf32>
    %59 = arith.addf %58, %57 : vector<8x384xf32>
    %60 = arith.divf %58, %59 : vector<8x384xf32>
    %61 = vector.extract_strided_slice %60 {offsets = [0, 0], sizes = [8, 128], strides = [1, 1]} : vector<8x384xf32> to vector<8x128xf32>
    %62 = vector.extract_strided_slice %60 {offsets = [0, 128], sizes = [8, 128], strides = [1, 1]} : vector<8x384xf32> to vector<8x128xf32>
    %63 = vector.extract_strided_slice %60 {offsets = [0, 256], sizes = [8, 128], strides = [1, 1]} : vector<8x384xf32> to vector<8x128xf32>
    %64 = vector.extract_strided_slice %54 {offsets = [0, 384], sizes = [8, 128], strides = [1, 1]} : vector<8x512xf32> to vector<8x128xf32>
    %65 = math.tanh %64 : vector<8x128xf32>
    %66 = arith.mulf %62, %45 : vector<8x128xf32>
    %67 = arith.mulf %61, %65 : vector<8x128xf32>
    %68 = arith.addf %66, %67 : vector<8x128xf32>
    %69 = math.tanh %68 : vector<8x128xf32>
    %70 = arith.mulf %63, %69 : vector<8x128xf32>
    %c8_i32_21 = arith.constant 8 : i32
    %71 = arith.muli %c2_i32, %c8_i32_21 : i32
    %72 = tpu.assume_multiple %71, 8 : i32
    %73 = arith.index_cast %72 : i32 to index
    %c0_22 = arith.constant 0 : index
    %74 = vector.load %arg12[%73, %c0_22] : memref<64x128xf32, #tpu.memory_space<vmem>>, vector<8x128xf32>
    tpu.vector_store %arg12[%73, %c0_22], %70 {strides = array<i32>} : memref<64x128xf32, #tpu.memory_space<vmem>>, vector<8x128xf32>,
    %c3_i32 = arith.constant 3 : i32
    %c0_23 = arith.constant 0 : index
    %c0_24 = arith.constant 0 : index
    %75 = vector.load %arg4[%c0_23, %c0_24] : memref<128x512xf32, #tpu.memory_space<vmem>>, vector<128x512xf32>
    %cst_25 = arith.constant dense<0.000000e+00> : vector<8x512xf32>
    %76 = tpu.matmul %70, %75, %cst_25 {dimension_numbers = #tpu.dot_dimension_numbers<[1], [0], [0], [1], [0, 0, 1, 1], [], []>} : vector<8x128xf32>, vector<128x512xf32>, vector<8x512xf32> -> vector<8x512xf32>
    %77 = arith.addf %3, %76 : vector<8x512xf32>
    %78 = vector.extract_strided_slice %77 {offsets = [0, 0], sizes = [8, 384], strides = [1, 1]} : vector<8x512xf32> to vector<8x384xf32>
    %79 = arith.negf %78 : vector<8x384xf32>
    %80 = math.exp %79 : vector<8x384xf32>
    %cst_26 = arith.constant 1.000000e+00 : f32
    %81 = vector.broadcast %cst_26 : f32 to vector<8x384xf32>
    %82 = arith.addf %81, %80 : vector<8x384xf32>
    %83 = arith.divf %81, %82 : vector<8x384xf32>
    %84 = vector.extract_strided_slice %83 {offsets = [0, 0], sizes = [8, 128], strides = [1, 1]} : vector<8x384xf32> to vector<8x128xf32>
    %85 = vector.extract_strided_slice %83 {offsets = [0, 128], sizes = [8, 128], strides = [1, 1]} : vector<8x384xf32> to vector<8x128xf32>
    %86 = vector.extract_strided_slice %83 {offsets = [0, 256], sizes = [8, 128], strides = [1, 1]} : vector<8x384xf32> to vector<8x128xf32>
    %87 = vector.extract_strided_slice %77 {offsets = [0, 384], sizes = [8, 128], strides = [1, 1]} : vector<8x512xf32> to vector<8x128xf32>
    %88 = math.tanh %87 : vector<8x128xf32>
    %89 = arith.mulf %85, %68 : vector<8x128xf32>
    %90 = arith.mulf %84, %88 : vector<8x128xf32>
    %91 = arith.addf %89, %90 : vector<8x128xf32>
    %92 = math.tanh %91 : vector<8x128xf32>
    %93 = arith.mulf %86, %92 : vector<8x128xf32>
    %c8_i32_27 = arith.constant 8 : i32
    %94 = arith.muli %c3_i32, %c8_i32_27 : i32
    %95 = tpu.assume_multiple %94, 8 : i32
    %96 = arith.index_cast %95 : i32 to index
    %c0_28 = arith.constant 0 : index
    %97 = vector.load %arg12[%96, %c0_28] : memref<64x128xf32, #tpu.memory_space<vmem>>, vector<8x128xf32>
    tpu.vector_store %arg12[%96, %c0_28], %93 {strides = array<i32>} : memref<64x128xf32, #tpu.memory_space<vmem>>, vector<8x128xf32>,
    %c4_i32 = arith.constant 4 : i32
    %c0_29 = arith.constant 0 : index
    %c0_30 = arith.constant 0 : index
    %98 = vector.load %arg4[%c0_29, %c0_30] : memref<128x512xf32, #tpu.memory_space<vmem>>, vector<128x512xf32>
    %cst_31 = arith.constant dense<0.000000e+00> : vector<8x512xf32>
    %99 = tpu.matmul %93, %98, %cst_31 {dimension_numbers = #tpu.dot_dimension_numbers<[1], [0], [0], [1], [0, 0, 1, 1], [], []>} : vector<8x128xf32>, vector<128x512xf32>, vector<8x512xf32> -> vector<8x512xf32>
    %100 = arith.addf %3, %99 : vector<8x512xf32>
    %101 = vector.extract_strided_slice %100 {offsets = [0, 0], sizes = [8, 384], strides = [1, 1]} : vector<8x512xf32> to vector<8x384xf32>
    %102 = arith.negf %101 : vector<8x384xf32>
    %103 = math.exp %102 : vector<8x384xf32>
    %cst_32 = arith.constant 1.000000e+00 : f32
    %104 = vector.broadcast %cst_32 : f32 to vector<8x384xf32>
    %105 = arith.addf %104, %103 : vector<8x384xf32>
    %106 = arith.divf %104, %105 : vector<8x384xf32>
    %107 = vector.extract_strided_slice %106 {offsets = [0, 0], sizes = [8, 128], strides = [1, 1]} : vector<8x384xf32> to vector<8x128xf32>
    %108 = vector.extract_strided_slice %106 {offsets = [0, 128], sizes = [8, 128], strides = [1, 1]} : vector<8x384xf32> to vector<8x128xf32>
    %109 = vector.extract_strided_slice %106 {offsets = [0, 256], sizes = [8, 128], strides = [1, 1]} : vector<8x384xf32> to vector<8x128xf32>
    %110 = vector.extract_strided_slice %100 {offsets = [0, 384], sizes = [8, 128], strides = [1, 1]} : vector<8x512xf32> to vector<8x128xf32>
    %111 = math.tanh %110 : vector<8x128xf32>
    %112 = arith.mulf %108, %91 : vector<8x128xf32>
    %113 = arith.mulf %107, %111 : vector<8x128xf32>
    %114 = arith.addf %112, %113 : vector<8x128xf32>
    %115 = math.tanh %114 : vector<8x128xf32>
    %116 = arith.mulf %109, %115 : vector<8x128xf32>
    %c8_i32_33 = arith.constant 8 : i32
    %117 = arith.muli %c4_i32, %c8_i32_33 : i32
    %118 = tpu.assume_multiple %117, 8 : i32
    %119 = arith.index_cast %118 : i32 to index
    %c0_34 = arith.constant 0 : index
    %120 = vector.load %arg12[%119, %c0_34] : memref<64x128xf32, #tpu.memory_space<vmem>>, vector<8x128xf32>
    tpu.vector_store %arg12[%119, %c0_34], %116 {strides = array<i32>} : memref<64x128xf32, #tpu.memory_space<vmem>>, vector<8x128xf32>,
    %c5_i32 = arith.constant 5 : i32
    %c0_35 = arith.constant 0 : index
    %c0_36 = arith.constant 0 : index
    %121 = vector.load %arg4[%c0_35, %c0_36] : memref<128x512xf32, #tpu.memory_space<vmem>>, vector<128x512xf32>
    %cst_37 = arith.constant dense<0.000000e+00> : vector<8x512xf32>
    %122 = tpu.matmul %116, %121, %cst_37 {dimension_numbers = #tpu.dot_dimension_numbers<[1], [0], [0], [1], [0, 0, 1, 1], [], []>} : vector<8x128xf32>, vector<128x512xf32>, vector<8x512xf32> -> vector<8x512xf32>
    %123 = arith.addf %3, %122 : vector<8x512xf32>
    %124 = vector.extract_strided_slice %123 {offsets = [0, 0], sizes = [8, 384], strides = [1, 1]} : vector<8x512xf32> to vector<8x384xf32>
    %125 = arith.negf %124 : vector<8x384xf32>
    %126 = math.exp %125 : vector<8x384xf32>
    %cst_38 = arith.constant 1.000000e+00 : f32
    %127 = vector.broadcast %cst_38 : f32 to vector<8x384xf32>
    %128 = arith.addf %127, %126 : vector<8x384xf32>
    %129 = arith.divf %127, %128 : vector<8x384xf32>
    %130 = vector.extract_strided_slice %129 {offsets = [0, 0], sizes = [8, 128], strides = [1, 1]} : vector<8x384xf32> to vector<8x128xf32>
    %131 = vector.extract_strided_slice %129 {offsets = [0, 128], sizes = [8, 128], strides = [1, 1]} : vector<8x384xf32> to vector<8x128xf32>
    %132 = vector.extract_strided_slice %129 {offsets = [0, 256], sizes = [8, 128], strides = [1, 1]} : vector<8x384xf32> to vector<8x128xf32>
    %133 = vector.extract_strided_slice %123 {offsets = [0, 384], sizes = [8, 128], strides = [1, 1]} : vector<8x512xf32> to vector<8x128xf32>
    %134 = math.tanh %133 : vector<8x128xf32>
    %135 = arith.mulf %131, %114 : vector<8x128xf32>
    %136 = arith.mulf %130, %134 : vector<8x128xf32>
    %137 = arith.addf %135, %136 : vector<8x128xf32>
    %138 = math.tanh %137 : vector<8x128xf32>
    %139 = arith.mulf %132, %138 : vector<8x128xf32>
    %c8_i32_39 = arith.constant 8 : i32
    %140 = arith.muli %c5_i32, %c8_i32_39 : i32
    %141 = tpu.assume_multiple %140, 8 : i32
    %142 = arith.index_cast %141 : i32 to index
    %c0_40 = arith.constant 0 : index
    %143 = vector.load %arg12[%142, %c0_40] : memref<64x128xf32, #tpu.memory_space<vmem>>, vector<8x128xf32>
    tpu.vector_store %arg12[%142, %c0_40], %139 {strides = array<i32>} : memref<64x128xf32, #tpu.memory_space<vmem>>, vector<8x128xf32>,
    %c6_i32 = arith.constant 6 : i32
    %c0_41 = arith.constant 0 : index
    %c0_42 = arith.constant 0 : index
    %144 = vector.load %arg4[%c0_41, %c0_42] : memref<128x512xf32, #tpu.memory_space<vmem>>, vector<128x512xf32>
    %cst_43 = arith.constant dense<0.000000e+00> : vector<8x512xf32>
    %145 = tpu.matmul %139, %144, %cst_43 {dimension_numbers = #tpu.dot_dimension_numbers<[1], [0], [0], [1], [0, 0, 1, 1], [], []>} : vector<8x128xf32>, vector<128x512xf32>, vector<8x512xf32> -> vector<8x512xf32>
    %146 = arith.addf %3, %145 : vector<8x512xf32>
    %147 = vector.extract_strided_slice %146 {offsets = [0, 0], sizes = [8, 384], strides = [1, 1]} : vector<8x512xf32> to vector<8x384xf32>
    %148 = arith.negf %147 : vector<8x384xf32>
    %149 = math.exp %148 : vector<8x384xf32>
    %cst_44 = arith.constant 1.000000e+00 : f32
    %150 = vector.broadcast %cst_44 : f32 to vector<8x384xf32>
    %151 = arith.addf %150, %149 : vector<8x384xf32>
    %152 = arith.divf %150, %151 : vector<8x384xf32>
    %153 = vector.extract_strided_slice %152 {offsets = [0, 0], sizes = [8, 128], strides = [1, 1]} : vector<8x384xf32> to vector<8x128xf32>
    %154 = vector.extract_strided_slice %152 {offsets = [0, 128], sizes = [8, 128], strides = [1, 1]} : vector<8x384xf32> to vector<8x128xf32>
    %155 = vector.extract_strided_slice %152 {offsets = [0, 256], sizes = [8, 128], strides = [1, 1]} : vector<8x384xf32> to vector<8x128xf32>
    %156 = vector.extract_strided_slice %146 {offsets = [0, 384], sizes = [8, 128], strides = [1, 1]} : vector<8x512xf32> to vector<8x128xf32>
    %157 = math.tanh %156 : vector<8x128xf32>
    %158 = arith.mulf %154, %137 : vector<8x128xf32>
    %159 = arith.mulf %153, %157 : vector<8x128xf32>
    %160 = arith.addf %158, %159 : vector<8x128xf32>
    %161 = math.tanh %160 : vector<8x128xf32>
    %162 = arith.mulf %155, %161 : vector<8x128xf32>
    %c8_i32_45 = arith.constant 8 : i32
    %163 = arith.muli %c6_i32, %c8_i32_45 : i32
    %164 = tpu.assume_multiple %163, 8 : i32
    %165 = arith.index_cast %164 : i32 to index
    %c0_46 = arith.constant 0 : index
    %166 = vector.load %arg12[%165, %c0_46] : memref<64x128xf32, #tpu.memory_space<vmem>>, vector<8x128xf32>
    tpu.vector_store %arg12[%165, %c0_46], %162 {strides = array<i32>} : memref<64x128xf32, #tpu.memory_space<vmem>>, vector<8x128xf32>,
    %c7_i32 = arith.constant 7 : i32
    %c0_47 = arith.constant 0 : index
    %c0_48 = arith.constant 0 : index
    %167 = vector.load %arg4[%c0_47, %c0_48] : memref<128x512xf32, #tpu.memory_space<vmem>>, vector<128x512xf32>
    %cst_49 = arith.constant dense<0.000000e+00> : vector<8x512xf32>
    %168 = tpu.matmul %162, %167, %cst_49 {dimension_numbers = #tpu.dot_dimension_numbers<[1], [0], [0], [1], [0, 0, 1, 1], [], []>} : vector<8x128xf32>, vector<128x512xf32>, vector<8x512xf32> -> vector<8x512xf32>
    %169 = arith.addf %3, %168 : vector<8x512xf32>
    %170 = vector.extract_strided_slice %169 {offsets = [0, 0], sizes = [8, 384], strides = [1, 1]} : vector<8x512xf32> to vector<8x384xf32>
    %171 = arith.negf %170 : vector<8x384xf32>
    %172 = math.exp %171 : vector<8x384xf32>
    %cst_50 = arith.constant 1.000000e+00 : f32
    %173 = vector.broadcast %cst_50 : f32 to vector<8x384xf32>
    %174 = arith.addf %173, %172 : vector<8x384xf32>
    %175 = arith.divf %173, %174 : vector<8x384xf32>
    %176 = vector.extract_strided_slice %175 {offsets = [0, 0], sizes = [8, 128], strides = [1, 1]} : vector<8x384xf32> to vector<8x128xf32>
    %177 = vector.extract_strided_slice %175 {offsets = [0, 128], sizes = [8, 128], strides = [1, 1]} : vector<8x384xf32> to vector<8x128xf32>
    %178 = vector.extract_strided_slice %175 {offsets = [0, 256], sizes = [8, 128], strides = [1, 1]} : vector<8x384xf32> to vector<8x128xf32>
    %179 = vector.extract_strided_slice %169 {offsets = [0, 384], sizes = [8, 128], strides = [1, 1]} : vector<8x512xf32> to vector<8x128xf32>
    %180 = math.tanh %179 : vector<8x128xf32>
    %181 = arith.mulf %177, %160 : vector<8x128xf32>
    %182 = arith.mulf %176, %180 : vector<8x128xf32>
    %183 = arith.addf %181, %182 : vector<8x128xf32>
    %184 = math.tanh %183 : vector<8x128xf32>
    %185 = arith.mulf %178, %184 : vector<8x128xf32>
    %c8_i32_51 = arith.constant 8 : i32
    %186 = arith.muli %c7_i32, %c8_i32_51 : i32
    %187 = tpu.assume_multiple %186, 8 : i32
    %188 = arith.index_cast %187 : i32 to index
    %c0_52 = arith.constant 0 : index
    %189 = vector.load %arg12[%188, %c0_52] : memref<64x128xf32, #tpu.memory_space<vmem>>, vector<8x128xf32>
    tpu.vector_store %arg12[%188, %c0_52], %185 {strides = array<i32>} : memref<64x128xf32, #tpu.memory_space<vmem>>, vector<8x128xf32>,
    %c8_i32_53 = arith.constant 8 : i32
    %c0_54 = arith.constant 0 : index
    %c0_55 = arith.constant 0 : index
    %190 = vector.load %arg9[%c0_54, %c0_55] : memref<8x128xf32, #tpu.memory_space<vmem>>, vector<8x128xf32>
    tpu.vector_store %arg9[%c0_54, %c0_55], %185 {strides = array<i32>} : memref<8x128xf32, #tpu.memory_space<vmem>>, vector<8x128xf32>,
    %c0_56 = arith.constant 0 : index
    %c0_57 = arith.constant 0 : index
    %191 = vector.load %arg10[%c0_56, %c0_57] : memref<8x128xf32, #tpu.memory_space<vmem>>, vector<8x128xf32>
    tpu.vector_store %arg10[%c0_56, %c0_57], %183 {strides = array<i32>} : memref<8x128xf32, #tpu.memory_space<vmem>>, vector<8x128xf32>,
    %c0_58 = arith.constant 0 : index
    %c0_59 = arith.constant 0 : index
    %192 = vector.load %arg12[%c0_58, %c0_59] : memref<64x128xf32, #tpu.memory_space<vmem>>, vector<64x128xf32>
    %c0_60 = arith.constant 0 : index
    %c0_61 = arith.constant 0 : index
    %193 = vector.load %arg6[%c0_60, %c0_61] : memref<128x128xf32, #tpu.memory_space<vmem>>, vector<128x128xf32>
    %cst_62 = arith.constant dense<0.000000e+00> : vector<64x128xf32>
    %194 = tpu.matmul %192, %193, %cst_62 {dimension_numbers = #tpu.dot_dimension_numbers<[1], [0], [0], [1], [0, 0, 1, 1], [], []>} : vector<64x128xf32>, vector<128x128xf32>, vector<64x128xf32> -> vector<64x128xf32>
    %c0_63 = arith.constant 0 : index
    %c0_64 = arith.constant 0 : index
    %195 = vector.load %arg7[%c0_63, %c0_64] : memref<1x128xf32, #tpu.memory_space<vmem>>, vector<1x128xf32>
    %196 = vector.broadcast %195 : vector<1x128xf32> to vector<64x128xf32>
    %197 = arith.addf %194, %196 : vector<64x128xf32>
    %c0_65 = arith.constant 0 : index
    %c0_66 = arith.constant 0 : index
    %198 = vector.load %arg8[%c0_65, %c0_66] : memref<64x128xf32, #tpu.memory_space<vmem>>, vector<64x128xf32>
    tpu.vector_store %arg8[%c0_65, %c0_66], %197 {strides = array<i32>} : memref<64x128xf32, #tpu.memory_space<vmem>>, vector<64x128xf32>,
    return
  }
  func.func @transform_0(%arg0: i32, %arg1: i32) -> (i32, i32) {
    %c0_i32 = arith.constant 0 : i32
    %c0_i32_0 = arith.constant 0 : i32
    return %arg0, %c0_i32 : i32, i32
  }
  func.func @transform_1(%arg0: i32, %arg1: i32) -> (i32, i32) {
    %c0_i32 = arith.constant 0 : i32
    %c0_i32_0 = arith.constant 0 : i32
    %c0_i32_1 = arith.constant 0 : i32
    return %c0_i32, %c0_i32_0 : i32, i32
  }
  func.func @transform_2(%arg0: i32, %arg1: i32) -> (i32, i32) {
    %c0_i32 = arith.constant 0 : i32
    %c0_i32_0 = arith.constant 0 : i32
    %c0_i32_1 = arith.constant 0 : i32
    return %c0_i32, %c0_i32_0 : i32, i32
  }
  func.func @transform_3(%arg0: i32, %arg1: i32) -> (i32, i32) {
    %c0_i32 = arith.constant 0 : i32
    %c0_i32_0 = arith.constant 0 : i32
    %c0_i32_1 = arith.constant 0 : i32
    return %c0_i32, %c0_i32_0 : i32, i32
  }
  func.func @transform_4(%arg0: i32, %arg1: i32) -> (i32, i32) {
    %c0_i32 = arith.constant 0 : i32
    %c0_i32_0 = arith.constant 0 : i32
    %c0_i32_1 = arith.constant 0 : i32
    return %c0_i32, %c0_i32_0 : i32, i32
  }
  func.func @transform_5(%arg0: i32, %arg1: i32) -> (i32, i32) {
    %c0_i32 = arith.constant 0 : i32
    %c0_i32_0 = arith.constant 0 : i32
    %c0_i32_1 = arith.constant 0 : i32
    return %c0_i32, %c0_i32_0 : i32, i32
  }
  func.func @transform_6(%arg0: i32, %arg1: i32) -> (i32, i32) {
    %c1_i32 = arith.constant 1 : i32
    %0 = arith.muli %arg0, %c1_i32 : i32
    %1 = arith.addi %0, %arg1 : i32
    %c0_i32 = arith.constant 0 : i32
    %c0_i32_0 = arith.constant 0 : i32
    return %1, %c0_i32 : i32, i32
  }
}

</mosaic_0001>

<bundles_post_ra>
// kernel: route_lstm_forward.1
= control target key start
LH: loop header
LB: loop body
LE: loop exit
PB: predicated region body
PF: predicated region fallthrough
CT: control target
= control target key end

     0   :  { %11 = vsyncpa [#allocation7], 0  ;;  %s3887_s0 = inlined_call_operand.vmem [shape: f32[8,72], index: 0, kind: input, shape index: {}]   ;;  %s3888_s1 = inlined_call_operand.hbm [shape: f32[72,512], index: 1, kind: input, shape index: {}]   ;;  %s3889_s2 = inlined_call_operand.hbm [shape: f32[128,512], index: 2, kind: input, shape index: {}]   ;;  %s3890_s3 = inlined_call_operand.vmem [shape: f32[1,512], index: 3, kind: input, shape index: {}]   ;;  %s3891_s4 = inlined_call_operand.vmem [shape: f32[128,128], index: 4, kind: input, shape index: {}]   ;;  %s3892_s5 = inlined_call_operand.hbm [shape: f32[1,128], index: 5, kind: input, shape index: {}]   ;;  %s3893_s6 = inlined_call_operand.vmem [shape: f32[64,128], index: 6, kind: output, shape index: {}]  }
   0x1   :  { %12 = vsyncpa [#allocation9], 0  ;;  %s3233_s21 = smov [#allocation8]   ;;  %s3234_s23 = smov [#allocation6]  }
   0x2   :  { %s32_s22 = sshll.u32 %s3233_s21, 4  ;;  %s20_s24 = sshll.u32 %s3234_s23, 4  ;;  %s33_s22 = int_to_ptr.vmem [resolvable:$true] %s32_s22  ;;  %s3274_s24 = int_to_ptr.vmem [resolvable:$true] %s20_s24 }
   0x3   :  { %s3163_s27 = scalar_lea.hbm %s3889_s2, 8192 }
   0x4   :  { %p3164_p0 = scmp.ne.s32.totalorder %s3889_s2, %s3163_s27  ;;  %p3167_p1 = scmp.lt.u32.totalorder %s3163_s27, %s3889_s2 }
   0x6   :  { %p3169_p2 = pnand %p3167_p1, %p3164_p0 }
   0x8   :  { %3172 = shalt.err (!%p3169_p2)
}
   0x9   :  { %s3173_s8 = scalar_lea.vmem %s33_s22, 8192  ;;  %p3178_p4 = scmp.lt.s32.totalorder %s33_s22, %s33_s22 }
   0xa   :  { %p3174_p3 = scmp.ne.s32.totalorder %s33_s22, %s3173_s8  ;;  %p3179_p5 = scmp.lt.s32.totalorder %s3173_s8, %s3173_s8 }
   0xc   :  { %p3180_p6 = por %p3179_p5, %p3178_p4 }
   0xe   :  { %p3181_p7 = pnand %p3180_p6, %p3174_p3 }
  0x10   :  { %3184 = shalt.err (!%p3181_p7)
}
  0x11   :  { %s3235_s9 = smov 512   ;;  %s3236_s10 = smov 32  }
  0x12   :  { %38 = dma.hbm_to_vmem [thread:$0]  %s3889_s2, 8192, %s33_s22, [#allocation9], %s3235_s9, %s3235_s9, %s3236_s10  }
  0x13   :  { %s3185_s15 = scalar_lea.hbm %s3888_s1, 4608 }
  0x14   :  { %p3186_p8 = scmp.ne.s32.totalorder %s3888_s1, %s3185_s15  ;;  %p3189_p9 = scmp.lt.u32.totalorder %s3185_s15, %s3888_s1 }
  0x16   :  { %p3191_p10 = pnand %p3189_p9, %p3186_p8 }
  0x18   :  { %3194 = shalt.err (!%p3191_p10)
}
  0x19   :  { %s3195_s20 = scalar_lea.vmem %s3274_s24, 4608  ;;  %p3200_p12 = scmp.lt.s32.totalorder %s3274_s24, %s3274_s24 }
  0x1a   :  { %p3196_p11 = scmp.ne.s32.totalorder %s3274_s24, %s3195_s20  ;;  %p3201_p13 = scmp.lt.s32.totalorder %s3195_s20, %s3195_s20 }
  0x1c   :  { %p3202_p0 = por %p3201_p13, %p3200_p12 }
  0x1e   :  { %p3203_p1 = pnand %p3202_p0, %p3196_p11 }
  0x20   :  { %3206 = shalt.err (!%p3203_p1)
}
  0x21   :  { %26 = dma.hbm_to_vmem [thread:$0]  %s3888_s1, 4608, %s3274_s24, [#allocation7], %s3235_s9, %s3235_s9, %s3236_s10  }
  0x22   :  { %s3237_s22 = smov [#allocation10]   ;;  %s3207_s27 = scalar_lea.hbm %s3892_s5, 16 }
  0x23   :  { %s49_s23 = sshll.u32 %s3237_s22, 4  ;;  %p3208_p2 = scmp.ne.s32.totalorder %s3892_s5, %s3207_s27  ;;  %s50_s23 = int_to_ptr.vmem [resolvable:$true] %s49_s23 }
  0x24   :  { %p3211_p3 = scmp.lt.u32.totalorder %s3207_s27, %s3892_s5 }
  0x26   :  { %p3213_p4 = pnand %p3211_p3, %p3208_p2 }
  0x28   :  { %3216 = shalt.err (!%p3213_p4)
}
  0x29   :  { %s3217_s8 = scalar_lea.vmem %s50_s23, 16  ;;  %s3221_s1 = scalar_lea.vmem %s50_s23, 32 }
  0x2a   :  { %p3218_p5 = scmp.ne.s32.totalorder %s50_s23, %s3217_s8  ;;  %p3222_p6 = scmp.lt.s32.totalorder %s50_s23, %s50_s23 }
  0x2b   :  { %p3223_p7 = scmp.lt.s32.totalorder %s3221_s1, %s3217_s8 }
  0x2d   :  { %p3224_p8 = por %p3223_p7, %p3222_p6 }
  0x2f   :  { %p3225_p9 = pnand %p3224_p8, %p3218_p5 }
  0x31   :  { %3228 = shalt.err (!%p3225_p9)
}
  0x32   :  { %52 = dma.hbm_to_vmem [thread:$0]  %s3892_s5, 16, %s50_s23, [#allocation9]  }
  0x33   :  { %3229 = dma.done.wait [#allocation7], 4608  }
  0x34   :  { %3230 = vsyncadd [#allocation7], 4294962688 }
  0x35   :  { %3231 = dma.done.wait [#allocation9], 8208  }
  0x36   :  { %3232 = vsyncadd [#allocation9], 4294959088  ;;  %v3238_v0 = vmov 0.0   ;;  %v84_v1 = vld [vmem:[#allocation6 + $0x8] sm:$0xff]  ;;  %v83_v6 = vld [vmem:[#allocation6] sm:$0xff]  ;;  %vm141_vm0 = vcmask 588800  }
  0x37   :  { %209 = vmatprep.mubr.f32.mxu1 %v3238_v0  ;;  %425 = vmatprep.mubr.f32.mxu0 %v3238_v0  ;;  %v88_v2 = vld [vmem:[#allocation6 + $0x28] sm:$0xff]  ;;  %v87_v7 = vld [vmem:[#allocation6 + $0x20] sm:$0xff]  ;;  %v86_v55 = vld [vmem:[#allocation6 + $0x18] sm:$0xff] }
  0x38   :  { %v298_v3 = vld [vmem:[#allocation8 + $0x8] sm:$0xff]  ;;  %v2453_v4 = vpack.c.bf16 %v88_v2, %v84_v1  ;;  %v2455_v9 = vpack.c.bf16 %v87_v7, %v83_v6  ;;  %v297_v10 = vld [vmem:[#allocation8] sm:$0xff]  ;;  %v90_v56 = vld [vmem:[#allocation6 + $0x38] sm:$0xff] }
  0x39   :  { %v302_v5 = vld [vmem:[#allocation8 + $0x28] sm:$0xff]  ;;  %v301_v11 = vld [vmem:[#allocation8 + $0x20] sm:$0xff]  ;;  %v85_v59 = vld [vmem:[#allocation6 + $0x10] sm:$0xff] }
  0x3a   :  { %v3319_v8 = vpack.c.bf16 %v302_v5, %v298_v3  ;;  %v92_v12 = vld [vmem:[#allocation6 + $0x48] sm:$0xff]  ;;  %2454 = vmatprep.subr.bf16.mxu1 %v2453_v4  ;;  %v3321_v13 = vpack.c.bf16 %v301_v11, %v297_v10  ;;  %v91_v19 = vld [vmem:[#allocation6 + $0x40] sm:$0xff]  ;;  %v89_v60 = vld [vmem:[#allocation6 + $0x30] sm:$0xff]  ;;  %v2469_v3 = vpack.c.bf16 %v90_v56, %v86_v55 }
  0x3b   :  { %v96_v14 = vld [vmem:[#allocation6 + $0x68] sm:$0xff]  ;;  %2456 = vmatpush1.bf16.msra.mxu1 %v2455_v9  ;;  %v95_v20 = vld [vmem:[#allocation6 + $0x60] sm:$0xff]  ;;  %v94_v63 = vld [vmem:[#allocation6 + $0x58] sm:$0xff]  ;;  %v2471_v7 = vpack.c.bf16 %v89_v60, %v85_v59 }
  0x3c   :  { %v306_v15 = vld [vmem:[#allocation8 + $0x48] sm:$0xff]  ;;  %2486 = vmatprep.subr.bf16.mxu0 %v3319_v8  ;;  %v2457_v17 = vpack.c.bf16 %v96_v14, %v92_v12  ;;  %v305_v21 = vld [vmem:[#allocation8 + $0x40] sm:$0xff]  ;;  %v2459_v22 = vpack.c.bf16 %v95_v20, %v91_v19  ;;  %v98_v1 = vld [vmem:[#allocation6 + $0x78] sm:$0xff] }
  0x3d   :  { %v310_v16 = vld [vmem:[#allocation8 + $0x68] sm:$0xff]  ;;  %2488 = vmatpush1.bf16.msra.mxu0 %v3321_v13  ;;  %v309_v23 = vld [vmem:[#allocation8 + $0x60] sm:$0xff]  ;;  %v3351_v2 = vld [vmem:[%s3887_s0] sm:$0xff]  ;;  %v2473_v11 = vpack.c.bf16 %v98_v1, %v94_v63 }
  0x3e   :  { %v3324_v18 = vpack.c.bf16 %v310_v16, %v306_v15  ;;  %v100_v24 = vld [vmem:[#allocation6 + $0x88] sm:$0xff]  ;;  %2458 = vmatprep.subr.bf16.mxu1 %v2457_v17  ;;  %v3328_v26 = vpack.c.bf16 %v309_v23, %v305_v21  ;;  %v99_v30 = vld [vmem:[#allocation6 + $0x80] sm:$0xff]  ;;  %v93_v12 = vld [vmem:[#allocation6 + $0x50] sm:$0xff] }
  0x3f   :  { %v104_v25 = vld [vmem:[#allocation6 + $0xa8] sm:$0xff]  ;;  %v103_v32 = vld [vmem:[#allocation6 + $0xa0] sm:$0xff]  ;;  %2460 = vmatpush1.bf16.msra.mxu1 %v2459_v22  ;;  %v97_v14 = vld [vmem:[#allocation6 + $0x70] sm:$0xff] }
  0x40   :  { %2490 = vmatprep.subr.bf16.mxu0 %v3324_v18  ;;  %v2461_v27 = vpack.c.bf16 %v104_v25, %v100_v24  ;;  %v314_v28 = vld [vmem:[#allocation8 + $0x88] sm:$0xff]  ;;  %v313_v33 = vld [vmem:[#allocation8 + $0x80] sm:$0xff]  ;;  %v2463_v35 = vpack.c.bf16 %v103_v32, %v99_v30  ;;  %v102_v16 = vld [vmem:[#allocation6 + $0x98] sm:$0xff]  ;;  %v2475_v22 = vpack.c.bf16 %v97_v14, %v93_v12 }
  0x41   :  { %v318_v29 = vld [vmem:[#allocation8 + $0xa8] sm:$0xff]  ;;  %v317_v34 = vld [vmem:[#allocation8 + $0xa0] sm:$0xff]  ;;  %2492 = vmatpush1.bf16.msra.mxu0 %v3328_v26  ;;  %v106_v17 = vld [vmem:[#allocation6 + $0xb8] sm:$0xff] }
  0x42   :  { %v3330_v31 = vpack.c.bf16 %v318_v29, %v314_v28  ;;  %v108_v36 = vld [vmem:[#allocation6 + $0xc8] sm:$0xff]  ;;  %2462 = vmatprep.subr.bf16.mxu1 %v2461_v27  ;;  %v3333_v39 = vpack.c.bf16 %v317_v34, %v313_v33  ;;  %v107_v42 = vld [vmem:[#allocation6 + $0xc0] sm:$0xff]  ;;  %v2477_v25 = vpack.c.bf16 %v106_v17, %v102_v16  ;;  %v101_v27 = vld [vmem:[#allocation6 + $0x90] sm:$0xff] }
  0x43   :  { %v112_v37 = vld [vmem:[#allocation6 + $0xe8] sm:$0xff]  ;;  %v111_v43 = vld [vmem:[#allocation6 + $0xe0] sm:$0xff]  ;;  %2464 = vmatpush1.bf16.msra.mxu1 %v2463_v35  ;;  %v105_v28 = vld [vmem:[#allocation6 + $0xb0] sm:$0xff] }
  0x44   :  { %v322_v38 = vld [vmem:[#allocation8 + $0xc8] sm:$0xff]  ;;  %v2465_v40 = vpack.c.bf16 %v112_v37, %v108_v36  ;;  %2494 = vmatprep.subr.bf16.mxu0 %v3330_v31  ;;  %v321_v45 = vld [vmem:[#allocation8 + $0xc0] sm:$0xff]  ;;  %v2467_v49 = vpack.c.bf16 %v111_v43, %v107_v42  ;;  %v110_v30 = vld [vmem:[#allocation6 + $0xd8] sm:$0xff]  ;;  %v2479_v36 = vpack.c.bf16 %v105_v28, %v101_v27 }
  0x45   :  { %v326_v41 = vld [vmem:[#allocation8 + $0xe8] sm:$0xff]  ;;  %v325_v46 = vld [vmem:[#allocation8 + $0xe0] sm:$0xff]  ;;  %2496 = vmatpush1.bf16.msra.mxu0 %v3333_v39  ;;  %v114_v32 = vld [vmem:[#allocation6 + $0xf8] sm:$0xff] }
  0x46   :  { %v3336_v44 = vpack.c.bf16 %v326_v41, %v322_v38  ;;  %v330_v47 = vld [vmem:[#allocation8 + $0x108] sm:$0xff]  ;;  %2466 = vmatprep.subr.bf16.mxu1 %v2465_v40  ;;  %v3339_v50 = vpack.c.bf16 %v325_v46, %v321_v45  ;;  %v329_v53 = vld [vmem:[#allocation8 + $0x100] sm:$0xff]  ;;  %v2481_v37 = vpack.c.bf16 %v114_v32, %v110_v30  ;;  %v109_v38 = vld [vmem:[#allocation6 + $0xd0] sm:$0xff] }
  0x47   :  { %v334_v48 = vld [vmem:[#allocation8 + $0x128] sm:$0xff]  ;;  %v333_v54 = vld [vmem:[#allocation8 + $0x120] sm:$0xff]  ;;  %2468 = vmatpush1.bf16.msra.mxu1 %v2467_v49  ;;  %v113_v40 = vld [vmem:[#allocation6 + $0xf0] sm:$0xff] }
  0x48   :  { %v116_v51 = vld [vmem:[#allocation6 + $0x108] sm:$0xff]  ;;  %2498 = vmatprep.subr.bf16.mxu0 %v3336_v44  ;;  %v3342_v52 = vpack.c.bf16 %v334_v48, %v330_v47  ;;  %v115_v61 = vld [vmem:[#allocation6 + $0x100] sm:$0xff]  ;;  %v3345_v62 = vpack.c.bf16 %v333_v54, %v329_v53  ;;  %v2483_v42 = vpack.c.bf16 %v113_v40, %v109_v38  ;;  %v118_v43 = vld [vmem:[#allocation6 + $0x118] sm:$0xff] }
  0x49   :  { %v338_v57 = vld [vmem:[#allocation8 + $0x148] sm:$0xff]  ;;  %2500 = vmatpush1.bf16.msra.mxu0 %v3339_v50  ;;  %161 = vmatprep.subr.mxu1 %v116_v51  ;;  %v337_v5 = vld [vmem:[#allocation8 + $0x140] sm:$0xff]  ;;  %v300_v45 = vld [vmem:[#allocation8 + $0x18] sm:$0xff] }
  0x4a   :  { %v342_v58 = vld [vmem:[#allocation8 + $0x168] sm:$0xff]  ;;  %2502 = vmatprep.subr.bf16.mxu0 %v3342_v52  ;;  %v341_v6 = vld [vmem:[#allocation8 + $0x160] sm:$0xff]  ;;  %v304_v46 = vld [vmem:[#allocation8 + $0x38] sm:$0xff] }
  0x4b   :  { %v3353_v4 = vpack.c.bf16 %v342_v58, %v338_v57  ;;  %v346_v9 = vld [vmem:[#allocation8 + $0x188] sm:$0xff]  ;;  %162 = vmatpush1.msra.mxu1 %v115_v61  ;;  %v3358_v15 = vpack.c.bf16 %v341_v6, %v337_v5  ;;  %v345_v20 = vld [vmem:[#allocation8 + $0x180] sm:$0xff]  ;;  %v299_v47 = vld [vmem:[#allocation8 + $0x10] sm:$0xff]  ;;  %v3377_v54 = vpack.c.bf16 %v304_v46, %v300_v45 }
  0x4c   :  { %v350_v10 = vld [vmem:[#allocation8 + $0x1a8] sm:$0xff]  ;;  %2358 = vmatmul.mubr.msk.f32.vlgmr.msra.gmra.mrb[0].mxu1 %vm141_vm0, %v3351_v2  ;;  %2470 = vmatprep.subr.bf16.mxu1 %v2469_v3  ;;  %v349_v21 = vld [vmem:[#allocation8 + $0x1a0] sm:$0xff]  ;;  %v303_v48 = vld [vmem:[#allocation8 + $0x30] sm:$0xff] }
  0x4d   :  { %2504 = vmatpush1.bf16.msra.mxu0 %v3345_v62  ;;  %v3361_v19 = vpack.c.bf16 %v350_v10, %v346_v9  ;;  %2472 = vmatpush1.bf16.msra.mxu1 %v2471_v7  ;;  %v354_v23 = vld [vmem:[#allocation8 + $0x1c8] sm:$0xff]  ;;  %v3365_v29 = vpack.c.bf16 %v349_v21, %v345_v20  ;;  %v353_v34 = vld [vmem:[#allocation8 + $0x1c0] sm:$0xff]  ;;  %v308_v49 = vld [vmem:[#allocation8 + $0x58] sm:$0xff]  ;;  %v3379_v55 = vpack.c.bf16 %v303_v48, %v299_v47  ;;  %v121_v48 = vlaneseq }
  0x4e   :  { %2506 = vmatprep.subr.bf16.mxu0 %v3353_v4  ;;  %v358_v24 = vld [vmem:[#allocation8 + $0x1e8] sm:$0xff]  ;;  %280 = vmatprep.mubr.f32.mxu1 %v3238_v0  ;;  %v357_v35 = vld [vmem:[#allocation8 + $0x1e0] sm:$0xff]  ;;  %v312_v51 = vld [vmem:[#allocation8 + $0x78] sm:$0xff] }
  0x4f   :  { %2474 = vmatprep.subr.bf16.mxu1 %v2473_v11  ;;  %v3368_v33 = vpack.c.bf16 %v358_v24, %v354_v23  ;;  %v3371_v41 = vpack.c.bf16 %v357_v35, %v353_v34  ;;  %v117_v53 = vld [vmem:[#allocation6 + $0x110] sm:$0xff]  ;;  %v3383_v56 = vpack.c.bf16 %v312_v51, %v308_v49  ;;  %v316_v59 = vld [vmem:[#allocation8 + $0x98] sm:$0xff]  ;;  %v122_v49 = vshrl.u32 %v121_v48, 7 }
  0x50   :  { %v307_v57 = vld [vmem:[#allocation8 + $0x50] sm:$0xff]  ;;  %v320_v60 = vld [vmem:[#allocation8 + $0xb8] sm:$0xff] }
  0x51   :  { %2508 = vmatpush1.bf16.msra.mxu0 %v3358_v15  ;;  %2476 = vmatpush1.bf16.msra.mxu1 %v2475_v22  ;;  %v311_v58 = vld [vmem:[#allocation8 + $0x70] sm:$0xff]  ;;  %v3394_v63 = vpack.c.bf16 %v320_v60, %v316_v59  ;;  %v324_v5 = vld [vmem:[#allocation8 + $0xd8] sm:$0xff]  ;;  %v123_v59 = vsub.s32 0, %v122_v49 }
  0x52   :  { %2510 = vmatprep.subr.bf16.mxu0 %v3361_v19  ;;  %2478 = vmatprep.subr.bf16.mxu1 %v2477_v25  ;;  %v3390_v61 = vpack.c.bf16 %v311_v58, %v307_v57  ;;  %v315_v1 = vld [vmem:[#allocation8 + $0x90] sm:$0xff]  ;;  %v328_v6 = vld [vmem:[#allocation8 + $0xf8] sm:$0xff]  ;;  %v127_v57 = vsub.s32 1, %v122_v49 }
  0x53   :  { %v319_v3 = vld [vmem:[#allocation8 + $0xb0] sm:$0xff]  ;;  %v3402_v7 = vpack.c.bf16 %v328_v6, %v324_v5  ;;  %v332_v11 = vld [vmem:[#allocation8 + $0x118] sm:$0xff] }
  0x54   :  { %v323_v9 = vld [vmem:[#allocation8 + $0xd0] sm:$0xff]  ;;  %v336_v12 = vld [vmem:[#allocation8 + $0x138] sm:$0xff] }
  0x55   :  { %2512 = vmatpush1.bf16.msra.mxu0 %v3365_v29  ;;  %2480 = vmatpush1.bf16.msra.mxu1 %v2479_v36  ;;  %v327_v10 = vld [vmem:[#allocation8 + $0xf0] sm:$0xff]  ;;  %v3410_v16 = vpack.c.bf16 %v336_v12, %v332_v11  ;;  %v340_v21 = vld [vmem:[#allocation8 + $0x158] sm:$0xff] }
  0x56   :  { %2514 = vmatprep.subr.bf16.mxu0 %v3368_v33  ;;  %2482 = vmatprep.subr.bf16.mxu1 %v2481_v37  ;;  %v3407_v14 = vpack.c.bf16 %v327_v10, %v323_v9  ;;  %v331_v17 = vld [vmem:[#allocation8 + $0x110] sm:$0xff]  ;;  %v344_v22 = vld [vmem:[#allocation8 + $0x178] sm:$0xff] }
  0x57   :  { %v335_v20 = vld [vmem:[#allocation8 + $0x130] sm:$0xff]  ;;  %v3418_v24 = vpack.c.bf16 %v344_v22, %v340_v21  ;;  %v348_v28 = vld [vmem:[#allocation8 + $0x198] sm:$0xff]  ;;  %v135_v21 = vsub.s32 3, %v122_v49 }
  0x58   :  { %v3415_v23 = vpack.c.bf16 %v335_v20, %v331_v17  ;;  %v339_v25 = vld [vmem:[#allocation8 + $0x150] sm:$0xff]  ;;  %v352_v30 = vld [vmem:[#allocation8 + $0x1b8] sm:$0xff]  ;;  %v131_v20 = vsub.s32 2, %v122_v49 }
  0x59   :  { %2516 = vmatpush1.bf16.msra.mxu0 %v3371_v41  ;;  %2484 = vmatpush1.bf16.msra.mxu1 %v2483_v42  ;;  %v343_v27 = vld [vmem:[#allocation8 + $0x170] sm:$0xff]  ;;  %v3426_v34 = vpack.c.bf16 %v352_v30, %v348_v28  ;;  %v356_v37 = vld [vmem:[#allocation8 + $0x1d8] sm:$0xff] }
  0x5a   :  { %2550 = vmatprep.subr.bf16.mxu0 %v3319_v8  ;;  %232 = vmatprep.subr.mxu1 %v118_v43  ;;  %v3423_v32 = vpack.c.bf16 %v343_v27, %v339_v25  ;;  %v347_v35 = vld [vmem:[#allocation8 + $0x190] sm:$0xff]  ;;  %v360_v38 = vld [vmem:[#allocation8 + $0x1f8] sm:$0xff] }
  0x5b   :  { %v351_v36 = vld [vmem:[#allocation8 + $0x1b0] sm:$0xff]  ;;  %v3434_v42 = vpack.c.bf16 %v360_v38, %v356_v37 }
  0x5c   :  { %426 = vmatmul.mubr.f32.vlgmr.msra.gmra.mrb[0].mxu0 %v3238_v0  ;;  %v3431_v40 = vpack.c.bf16 %v351_v36, %v347_v35  ;;  %v355_v43 = vld [vmem:[#allocation8 + $0x1d0] sm:$0xff] }
  0x5d   :  { %2552 = vmatpush1.bf16.msra.mxu0 %v3321_v13  ;;  %660 = vmatprep.mubr.f32.mxu0 %v3238_v0  ;;  %v359_v45 = vld [vmem:[#allocation8 + $0x1f0] sm:$0xff] }
  0x5e   :  { %2554 = vmatprep.subr.bf16.mxu0 %v3324_v18  ;;  %233 = vmatpush1.msra.mxu1 %v117_v53  ;;  %v3439_v46 = vpack.c.bf16 %v359_v45, %v355_v43  ;;  %v119_v58 = vld [vmem:[%s3890_s3] sm:$0xf] }
  0x5f   :  { %2359 = vmatmul.mubr.msk.f32.vlgmr.msra.gmra.mrb[2].mxu1 %vm141_vm0, %v3351_v2  ;;  %2518 = vmatprep.subr.bf16.mxu1 %v3377_v54  ;;  %v3399_v2 = vpack.c.bf16 %v319_v3, %v315_v1  ;;  %v128_v3 = vrot.slane %v119_v58, %v127_v57  ;;  %v124_v5 = vrot.slane %v119_v58, %v123_v59 }
  0x60   :  { %2520 = vmatpush1.bf16.msra.mxu1 %v3379_v55  ;;  %496 = vmatprep.mubr.f32.mxu1 %v3238_v0  ;;  %v132_v25 = vrot.slane %v119_v58, %v131_v20  ;;  %v136_v28 = vrot.slane %v119_v58, %v135_v21 }
  0x61   :  { %2522 = vmatprep.subr.bf16.mxu1 %v3383_v56  ;;  %2556 = vmatpush1.bf16.msra.mxu0 %v3328_v26 }
  0x62   :  { %2558 = vmatprep.subr.bf16.mxu0 %v3330_v31 }
  0x64   :  { %2524 = vmatpush1.bf16.msra.mxu1 %v3390_v61 }
  0x65   :  { %2526 = vmatprep.subr.bf16.mxu1 %v3394_v63  ;;  %2560 = vmatpush1.bf16.msra.mxu0 %v3333_v39 }
  0x66   :  { %2562 = vmatprep.subr.bf16.mxu0 %v3336_v44 }
  0x68   :  { %2528 = vmatpush1.bf16.msra.mxu1 %v3399_v2 }
  0x69   :  { %2530 = vmatprep.subr.bf16.mxu1 %v3402_v7  ;;  %2564 = vmatpush1.bf16.msra.mxu0 %v3339_v50 }
  0x6a   :  { %2566 = vmatprep.subr.bf16.mxu0 %v3342_v52 }
  0x6c   :  { %2532 = vmatpush1.bf16.msra.mxu1 %v3407_v14 }
  0x6d   :  { %2534 = vmatprep.subr.bf16.mxu1 %v3410_v16  ;;  %2568 = vmatpush1.bf16.msra.mxu0 %v3345_v62 }
  0x6e   :  { %2570 = vmatprep.subr.bf16.mxu0 %v3353_v4 }
  0x70   :  { %2536 = vmatpush1.bf16.msra.mxu1 %v3415_v23 }
  0x71   :  { %2538 = vmatprep.subr.bf16.mxu1 %v3418_v24  ;;  %2572 = vmatpush1.bf16.msra.mxu0 %v3358_v15 }
  0x72   :  { %2574 = vmatprep.subr.bf16.mxu0 %v3361_v19 }
  0x74   :  { %2540 = vmatpush1.bf16.msra.mxu1 %v3423_v32 }
  0x75   :  { %2542 = vmatprep.subr.bf16.mxu1 %v3426_v34  ;;  %2576 = vmatpush1.bf16.msra.mxu0 %v3365_v29 }
  0x76   :  { %2578 = vmatprep.subr.bf16.mxu0 %v3368_v33 }
  0x78   :  { %2544 = vmatpush1.bf16.msra.mxu1 %v3431_v40 }
  0x79   :  { %2546 = vmatprep.subr.bf16.mxu1 %v3434_v42  ;;  %2580 = vmatpush1.bf16.msra.mxu0 %v3371_v41 }
  0x7a   :  { %2614 = vmatprep.subr.bf16.mxu0 %v3319_v8 }
  0x7c   :  { %2548 = vmatpush1.bf16.msra.mxu1 %v3439_v46 }
  0x7d   :  { %2582 = vmatprep.subr.bf16.mxu1 %v3377_v54 }
  0x7f   :  { %497 = vmatmul.mubr.f32.vlgmr.msra.gmra.mrb[4].mxu1 %v3238_v0 }
  0x80   :  { %2584 = vmatpush1.bf16.msra.mxu1 %v3379_v55  ;;  %731 = vmatprep.mubr.f32.mxu1 %v3238_v0 }
  0x81   :  { %2586 = vmatprep.subr.bf16.mxu1 %v3383_v56 }
  0x84   :  { %2588 = vmatpush1.bf16.msra.mxu1 %v3390_v61 }
  0x85   :  { %2590 = vmatprep.subr.bf16.mxu1 %v3394_v63 }
  0x88   :  { %2592 = vmatpush1.bf16.msra.mxu1 %v3399_v2 }
  0x89   :  { %2594 = vmatprep.subr.bf16.mxu1 %v3402_v7 }
  0x8c   :  { %2596 = vmatpush1.bf16.msra.mxu1 %v3407_v14 }
  0x8d   :  { %2598 = vmatprep.subr.bf16.mxu1 %v3410_v16 }
  0x90   :  { %2600 = vmatpush1.bf16.msra.mxu1 %v3415_v23 }
  0x91   :  { %2602 = vmatprep.subr.bf16.mxu1 %v3418_v24 }
  0x94   :  { %2604 = vmatpush1.bf16.msra.mxu1 %v3423_v32 }
  0x95   :  { %2606 = vmatprep.subr.bf16.mxu1 %v3426_v34 }
  0x98   :  { %2608 = vmatpush1.bf16.msra.mxu1 %v3431_v40 }
  0x99   :  { %2610 = vmatprep.subr.bf16.mxu1 %v3434_v42 }
  0x9c   :  { %2612 = vmatpush1.bf16.msra.mxu1 %v3439_v46 }
  0x9d   :  { %2646 = vmatprep.subr.bf16.mxu1 %v3377_v54 }
 0x11f   :  { %v211_v8 = vpop.f32.mrb[0].mxu1 }
 0x120   :  { %v213_v47 = vpop.f32.mrb[1].mxu1  ;;  %v3469_v9 = vadd.f32 %v211_v8, %v124_v5 }
 0x121   :  { %v3467_v6 = vadd.f32 %v213_v47, %v128_v3 }
 0x12f   :  { %v427_v51 = vpop.f32.mrb[0].mxu0 }
 0x130   :  { %v429_v53 = vpop.f32.mrb[1].mxu0  ;;  %v503_v11 = vadd.f32 %v427_v51, %v3469_v9 }
 0x131   :  { %v504_v10 = vadd.f32 %v429_v53, %v3467_v6 }
 0x132   :  { %v282_v60 = vpop.f32.mrb[2].mxu1  ;;  %v2360_v17 = vmul.f32 -1.442695, %v503_v11 }
 0x133   :  { %v284_v1 = vpop.f32.mrb[3].mxu1  ;;  %v2361_v12 = vmul.f32 -1.442695, %v504_v10  ;;  %v3473_v36 = vadd.f32 %v282_v60, %v132_v25 }
 0x134   :  { %v3475_v37 = vadd.f32 %v284_v1, %v136_v28 }
 0x135   :  { %3035 = vpow2.f32 %v2361_v12 }
 0x136   :  { %3037 = vpow2.f32 %v2360_v17 }
 0x13f   :  { %v3036_v22 = vpop.eup %3035 }
 0x140   :  { %v3038_v27 = vpop.eup %3037  ;;  %v517_v30 = vadd.f32 1.0, %v3036_v22 }
 0x141   :  { %v516_v35 = vadd.f32 1.0, %v3038_v27 }
 0x142   :  { %3039 = vrcp.f32 %v517_v30  ;;  %v1020_v30 = vld [vmem:[#allocation8 + $0x80] sm:$0xff] }
 0x143   :  { %3041 = vrcp.f32 %v516_v35  ;;  %v1024_v35 = vld [vmem:[#allocation8 + $0xa0] sm:$0xff] }
 0x14c   :  { %v3040_v48 = vpop.eup %3039 }
 0x14d   :  { %v3042_v49 = vpop.eup %3041  ;;  %v526_v57 = vmul.f32 0.0, %v3040_v48  ;;  %v1032_v48 = vld [vmem:[#allocation8 + $0xe0] sm:$0xff] }
 0x152   :  { %v498_v38 = vpop.f32.mrb[4].mxu1 }
 0x153   :  { %v505_v43 = vadd.f32 %v498_v38, %v3473_v36  ;;  %v500_v45 = vpop.f32.mrb[5].mxu1  ;;  %v3562_v38 = vpack.c.bf16 %v1024_v35, %v1020_v30 }
 0x154   :  { %v506_v8 = vadd.f32 %v500_v45, %v3475_v37  ;;  %v1033_v45 = vld [vmem:[#allocation8 + $0xe8] sm:$0xff] }
 0x155   :  { %v2362_v47 = vmul.f32 -1.442695, %v505_v43  ;;  %v1029_v43 = vld [vmem:[#allocation8 + $0xc8] sm:$0xff] }
 0x156   :  { %3043 = vtanh.f32 %v506_v8  ;;  %v3566_v8 = vpack.c.bf16 %v1033_v45, %v1029_v43 }
 0x157   :  { %3045 = vpow2.f32 %v2362_v47  ;;  %v1028_v47 = vld [vmem:[#allocation8 + $0xc0] sm:$0xff] }
 0x160   :  { %v3044_v51 = vpop.eup %3043 }
 0x161   :  { %v3046_v53 = vpop.eup %3045  ;;  %v527_v58 = vmul.f32 %v3044_v51, %v3042_v49  ;;  %v3568_v49 = vpack.c.bf16 %v1032_v48, %v1028_v47  ;;  %v1037_v51 = vld [vmem:[#allocation8 + $0x108] sm:$0xff] }
 0x162   :  { %v518_v59 = vadd.f32 1.0, %v3046_v53  ;;  %v1041_v53 = vld [vmem:[#allocation8 + $0x128] sm:$0xff] }
 0x163   :  { %v3479_v60 = vadd.f32 %v527_v58, %v526_v57  ;;  %v3572_v57 = vpack.c.bf16 %v1041_v53, %v1037_v51  ;;  %v1036_v58 = vld [vmem:[#allocation8 + $0x100] sm:$0xff] }
 0x164   :  { %3047 = vrcp.f32 %v518_v59  ;;  %v1040_v59 = vld [vmem:[#allocation8 + $0x120] sm:$0xff] }
 0x165   :  { %3049 = vtanh.f32 %v3479_v60 }
 0x16e   :  { %v3048_v1 = vpop.eup %3047 }
 0x16f   :  { %v3050_v3 = vpop.eup %3049 }
 0x170   :  { %v3482_v5 = vmul.f32 %v3050_v3, %v3048_v1  ;;  %v1045_v1 = vld [vmem:[#allocation8 + $0x148] sm:$0xff] }
 0x171   :  { %v1049_v3 = vld [vmem:[#allocation8 + $0x168] sm:$0xff] }
 0x172   :  { %661 = vmatmul.mubr.f32.vlgmr.msra.gmra.mrb[2].mxu0 %v3482_v5  ;;  %732 = vmatmul.mubr.f32.vlgmr.msra.gmra.mrb[6].mxu1 %v3482_v5 }
 0x173   :  { %2616 = vmatpush1.bf16.msra.mxu0 %v3321_v13  ;;  %2648 = vmatpush1.bf16.msra.mxu1 %v3379_v55 }
 0x174   :  { %2618 = vmatprep.subr.bf16.mxu0 %v3324_v18  ;;  %2650 = vmatprep.subr.bf16.mxu1 %v3383_v56 }
 0x175   :  { %896 = vmatprep.mubr.f32.mxu0 %v3238_v0  ;;  %967 = vmatprep.mubr.f32.mxu1 %v3238_v0 }
 0x177   :  { %2620 = vmatpush1.bf16.msra.mxu0 %v3328_v26  ;;  %2652 = vmatpush1.bf16.msra.mxu1 %v3390_v61 }
 0x178   :  { %2622 = vmatprep.subr.bf16.mxu0 %v3330_v31  ;;  %2654 = vmatprep.subr.bf16.mxu1 %v3394_v63 }
 0x17b   :  { %2624 = vmatpush1.bf16.msra.mxu0 %v3333_v39  ;;  %2656 = vmatpush1.bf16.msra.mxu1 %v3399_v2 }
 0x17c   :  { %2626 = vmatprep.subr.bf16.mxu0 %v3336_v44  ;;  %2658 = vmatprep.subr.bf16.mxu1 %v3402_v7 }
 0x17f   :  { %2628 = vmatpush1.bf16.msra.mxu0 %v3339_v50  ;;  %2660 = vmatpush1.bf16.msra.mxu1 %v3407_v14 }
 0x180   :  { %2630 = vmatprep.subr.bf16.mxu0 %v3342_v52  ;;  %2662 = vmatprep.subr.bf16.mxu1 %v3410_v16 }
 0x183   :  { %2632 = vmatpush1.bf16.msra.mxu0 %v3345_v62  ;;  %2664 = vmatpush1.bf16.msra.mxu1 %v3415_v23 }
 0x184   :  { %2634 = vmatprep.subr.bf16.mxu0 %v3353_v4  ;;  %2666 = vmatprep.subr.bf16.mxu1 %v3418_v24 }
 0x187   :  { %2636 = vmatpush1.bf16.msra.mxu0 %v3358_v15  ;;  %2668 = vmatpush1.bf16.msra.mxu1 %v3423_v32 }
 0x188   :  { %2638 = vmatprep.subr.bf16.mxu0 %v3361_v19  ;;  %2670 = vmatprep.subr.bf16.mxu1 %v3426_v34 }
 0x18b   :  { %2640 = vmatpush1.bf16.msra.mxu0 %v3365_v29  ;;  %2672 = vmatpush1.bf16.msra.mxu1 %v3431_v40 }
 0x18c   :  { %2642 = vmatprep.subr.bf16.mxu0 %v3368_v33  ;;  %2674 = vmatprep.subr.bf16.mxu1 %v3434_v42 }
 0x18f   :  { %2644 = vmatpush1.bf16.msra.mxu0 %v3371_v41  ;;  %2676 = vmatpush1.bf16.msra.mxu1 %v3439_v46 }
 0x190   :  { %2710 = vmatprep.subr.bf16.mxu1 %v3377_v54 }
 0x245   :  { %v662_v13 = vpop.f32.mrb[2].mxu0  ;;  %v733_v18 = vpop.f32.mrb[6].mxu1 }
 0x246   :  { %v738_v26 = vadd.f32 %v662_v13, %v3469_v9  ;;  %v664_v31 = vpop.f32.mrb[3].mxu0  ;;  %v735_v39 = vpop.f32.mrb[7].mxu1  ;;  %v740_v62 = vadd.f32 %v733_v18, %v3473_v36  ;;  %v3578_v13 = vpack.c.bf16 %v1049_v3, %v1045_v1  ;;  %v1044_v18 = vld [vmem:[#allocation8 + $0x140] sm:$0xff]  ;;  %v1242_v1 = vld [vmem:[#allocation8 + $0x10] sm:$0xff] }
 0x247   :  { %v739_v44 = vadd.f32 %v664_v31, %v3467_v6  ;;  %v741_v4 = vadd.f32 %v735_v39, %v3475_v37  ;;  %v1053_v39 = vld [vmem:[#allocation8 + $0x188] sm:$0xff]  ;;  %v1246_v3 = vld [vmem:[#allocation8 + $0x30] sm:$0xff] }
 0x248   :  { %v2363_v50 = vmul.f32 -1.442695, %v738_v26  ;;  %v2365_v15 = vmul.f32 -1.442695, %v740_v62  ;;  %v1048_v26 = vld [vmem:[#allocation8 + $0x160] sm:$0xff] }
 0x249   :  { %v2364_v52 = vmul.f32 -1.442695, %v739_v44  ;;  %v3580_v31 = vpack.c.bf16 %v1048_v26, %v1044_v18  ;;  %v1057_v44 = vld [vmem:[#allocation8 + $0x1a8] sm:$0xff]  ;;  %v1056_v62 = vld [vmem:[#allocation8 + $0x1a0] sm:$0xff]  ;;  %v3629_v18 = vpack.c.bf16 %v1246_v3, %v1242_v1  ;;  %v1251_v26 = vld [vmem:[#allocation8 + $0x58] sm:$0xff] }
 0x24a   :  { %3051 = vpow2.f32 %v2363_v50  ;;  %v1052_v50 = vld [vmem:[#allocation8 + $0x180] sm:$0xff]  ;;  %v1299_v1 = vld [vmem:[#allocation8 + $0x1d8] sm:$0xff] }
 0x24b   :  { %3053 = vpow2.f32 %v2364_v52  ;;  %v3583_v52 = vpack.c.bf16 %v1057_v44, %v1053_v39  ;;  %v1255_v39 = vld [vmem:[#allocation8 + $0x78] sm:$0xff] }
 0x24c   :  { %3055 = vtanh.f32 %v741_v4  ;;  %v1061_v4 = vld [vmem:[#allocation8 + $0x1c8] sm:$0xff]  ;;  %v3633_v44 = vpack.c.bf16 %v1255_v39, %v1251_v26  ;;  %v1303_v3 = vld [vmem:[#allocation8 + $0x1f8] sm:$0xff] }
 0x24d   :  { %3057 = vpow2.f32 %v2365_v15  ;;  %v1065_v15 = vld [vmem:[#allocation8 + $0x1e8] sm:$0xff]  ;;  %v3668_v39 = vpack.c.bf16 %v1303_v3, %v1299_v1 }
 0x254   :  { %v3052_v19 = vpop.eup %3051 }
 0x255   :  { %v751_v29 = vadd.f32 1.0, %v3052_v19  ;;  %v3054_v33 = vpop.eup %3053  ;;  %v3586_v19 = vpack.c.bf16 %v1056_v62, %v1052_v50  ;;  %v1250_v50 = vld [vmem:[#allocation8 + $0x50] sm:$0xff] }
 0x256   :  { %v752_v41 = vadd.f32 1.0, %v3054_v33  ;;  %v3056_v54 = vpop.eup %3055  ;;  %v1060_v33 = vld [vmem:[#allocation8 + $0x1c0] sm:$0xff]  ;;  %v1254_v62 = vld [vmem:[#allocation8 + $0x70] sm:$0xff] }
 0x257   :  { %3059 = vrcp.f32 %v751_v29  ;;  %v3058_v10 = vpop.eup %3057  ;;  %v3589_v29 = vpack.c.bf16 %v1065_v15, %v1061_v4  ;;  %v3635_v4 = vpack.c.bf16 %v1254_v62, %v1250_v50  ;;  %v1259_v15 = vld [vmem:[#allocation8 + $0x98] sm:$0xff]  ;;  %v1298_v50 = vld [vmem:[#allocation8 + $0x1d0] sm:$0xff] }
 0x258   :  { %3061 = vrcp.f32 %v752_v41  ;;  %v753_v20 = vadd.f32 1.0, %v3058_v10  ;;  %v1064_v41 = vld [vmem:[#allocation8 + $0x1e0] sm:$0xff]  ;;  %v1302_v62 = vld [vmem:[#allocation8 + $0x1f0] sm:$0xff] }
 0x25a   :  { %3063 = vrcp.f32 %v753_v20 }
 0x261   :  { %v3060_v11 = vpop.eup %3059 }
 0x262   :  { %v762_v12 = vmul.f32 %v3060_v11, %v3056_v54  ;;  %v3062_v17 = vpop.eup %3061  ;;  %v3592_v54 = vpack.c.bf16 %v1064_v41, %v1060_v33  ;;  %v1263_v33 = vld [vmem:[#allocation8 + $0xb8] sm:$0xff] }
 0x263   :  { %v761_v21 = vmul.f32 %v3062_v17, %v3479_v60  ;;  %v3574_v60 = vpack.c.bf16 %v1040_v59, %v1036_v58  ;;  %v1247_v58 = vld [vmem:[#allocation8 + $0x38] sm:$0xff]  ;;  %v3639_v41 = vpack.c.bf16 %v1263_v33, %v1259_v15  ;;  %v3671_v15 = vpack.c.bf16 %v1302_v62, %v1298_v50 }
 0x264   :  { %v3064_v25 = vpop.eup %3063 }
 0x265   :  { %v3524_v22 = vadd.f32 %v762_v12, %v761_v21 }
 0x267   :  { %3065 = vtanh.f32 %v3524_v22 }
 0x271   :  { %v3066_v27 = vpop.eup %3065 }
 0x272   :  { %v3527_v28 = vmul.f32 %v3066_v27, %v3064_v25 }
 0x274   :  { %897 = vmatmul.mubr.f32.vlgmr.msra.gmra.mrb[4].mxu0 %v3527_v28  ;;  %968 = vmatmul.mubr.f32.vlgmr.msra.gmra.mrb[8].mxu1 %v3527_v28 }
 0x275   :  { %2712 = vmatpush1.bf16.msra.mxu1 %v3379_v55  ;;  %1132 = vmatprep.mubr.f32.mxu0 %v3238_v0  ;;  %v1005_v55 = vld [vmem:[#allocation8 + $0x8] sm:$0xff] }
 0x276   :  { %2714 = vmatprep.subr.bf16.mxu1 %v3383_v56  ;;  %1203 = vmatprep.mubr.f32.mxu1 %v3238_v0  ;;  %v1009_v56 = vld [vmem:[#allocation8 + $0x28] sm:$0xff] }
 0x279   :  { %2716 = vmatpush1.bf16.msra.mxu1 %v3390_v61  ;;  %v3548_v61 = vpack.c.bf16 %v1009_v56, %v1005_v55 }
 0x27a   :  { %2718 = vmatprep.subr.bf16.mxu1 %v3394_v63  ;;  %v1004_v63 = vld [vmem:[#allocation8] sm:$0xff] }
 0x27b   :  { %2678 = vmatprep.subr.bf16.mxu0 %v3548_v61 }
 0x27d   :  { %2720 = vmatpush1.bf16.msra.mxu1 %v3399_v2  ;;  %v1008_v2 = vld [vmem:[#allocation8 + $0x20] sm:$0xff] }
 0x27e   :  { %2722 = vmatprep.subr.bf16.mxu1 %v3402_v7  ;;  %v3550_v7 = vpack.c.bf16 %v1008_v2, %v1004_v63 }
 0x280   :  { %2680 = vmatpush1.bf16.msra.mxu0 %v3550_v7 }
 0x281   :  { %2724 = vmatpush1.bf16.msra.mxu1 %v3407_v14  ;;  %v1013_v14 = vld [vmem:[#allocation8 + $0x48] sm:$0xff] }
 0x282   :  { %2726 = vmatprep.subr.bf16.mxu1 %v3410_v16  ;;  %v1017_v16 = vld [vmem:[#allocation8 + $0x68] sm:$0xff] }
 0x285   :  { %2728 = vmatpush1.bf16.msra.mxu1 %v3415_v23  ;;  %v3554_v23 = vpack.c.bf16 %v1017_v16, %v1013_v14 }
 0x286   :  { %2730 = vmatprep.subr.bf16.mxu1 %v3418_v24  ;;  %v1012_v24 = vld [vmem:[#allocation8 + $0x40] sm:$0xff] }
 0x287   :  { %2682 = vmatprep.subr.bf16.mxu0 %v3554_v23 }
 0x289   :  { %2732 = vmatpush1.bf16.msra.mxu1 %v3423_v32  ;;  %v1016_v32 = vld [vmem:[#allocation8 + $0x60] sm:$0xff] }
 0x28a   :  { %2734 = vmatprep.subr.bf16.mxu1 %v3426_v34  ;;  %v3556_v34 = vpack.c.bf16 %v1016_v32, %v1012_v24 }
 0x28c   :  { %2684 = vmatpush1.bf16.msra.mxu0 %v3556_v34 }
 0x28d   :  { %2736 = vmatpush1.bf16.msra.mxu1 %v3431_v40  ;;  %v1021_v40 = vld [vmem:[#allocation8 + $0x88] sm:$0xff] }
 0x28e   :  { %2738 = vmatprep.subr.bf16.mxu1 %v3434_v42  ;;  %v1025_v42 = vld [vmem:[#allocation8 + $0xa8] sm:$0xff] }
 0x291   :  { %2740 = vmatpush1.bf16.msra.mxu1 %v3439_v46  ;;  %v3560_v46 = vpack.c.bf16 %v1025_v42, %v1021_v40 }
 0x293   :  { %2686 = vmatprep.subr.bf16.mxu0 %v3560_v46 }
 0x294   :  { %2688 = vmatpush1.bf16.msra.mxu0 %v3562_v38 }
 0x295   :  { %2690 = vmatprep.subr.bf16.mxu0 %v3566_v8 }
 0x298   :  { %2692 = vmatpush1.bf16.msra.mxu0 %v3568_v49 }
 0x299   :  { %2694 = vmatprep.subr.bf16.mxu0 %v3572_v57 }
 0x29c   :  { %2696 = vmatpush1.bf16.msra.mxu0 %v3574_v60 }
 0x29d   :  { %2698 = vmatprep.subr.bf16.mxu0 %v3578_v13 }
 0x2a0   :  { %2700 = vmatpush1.bf16.msra.mxu0 %v3580_v31 }
 0x2a1   :  { %2702 = vmatprep.subr.bf16.mxu0 %v3583_v52 }
 0x2a4   :  { %2704 = vmatpush1.bf16.msra.mxu0 %v3586_v19 }
 0x2a5   :  { %2706 = vmatprep.subr.bf16.mxu0 %v3589_v29 }
 0x2a8   :  { %2708 = vmatpush1.bf16.msra.mxu0 %v3592_v54 }
 0x2a9   :  { %2742 = vmatprep.subr.bf16.mxu0 %v3548_v61 }
 0x347   :  { %v898_v10 = vpop.f32.mrb[4].mxu0  ;;  %v969_v11 = vpop.f32.mrb[8].mxu1 }
 0x348   :  { %v974_v12 = vadd.f32 %v898_v10, %v3469_v9  ;;  %v900_v17 = vpop.f32.mrb[5].mxu0  ;;  %v971_v20 = vpop.f32.mrb[9].mxu1  ;;  %v976_v55 = vadd.f32 %v969_v11, %v3473_v36  ;;  %v1258_v10 = vld [vmem:[#allocation8 + $0x90] sm:$0xff] }
 0x349   :  { %v975_v21 = vadd.f32 %v900_v17, %v3467_v6  ;;  %v977_v56 = vadd.f32 %v971_v20, %v3475_v37  ;;  %v1262_v11 = vld [vmem:[#allocation8 + $0xb0] sm:$0xff]  ;;  %v1267_v17 = vld [vmem:[#allocation8 + $0xd8] sm:$0xff] }
 0x34a   :  { %v2366_v25 = vmul.f32 -1.442695, %v974_v12  ;;  %v2368_v63 = vmul.f32 -1.442695, %v976_v55  ;;  %v3641_v12 = vpack.c.bf16 %v1262_v11, %v1258_v10  ;;  %v1271_v20 = vld [vmem:[#allocation8 + $0xf8] sm:$0xff] }
 0x34b   :  { %v2367_v27 = vmul.f32 -1.442695, %v975_v21  ;;  %v3645_v21 = vpack.c.bf16 %v1271_v20, %v1267_v17 }
 0x34c   :  { %3067 = vpow2.f32 %v2366_v25  ;;  %v1266_v25 = vld [vmem:[#allocation8 + $0xd0] sm:$0xff] }
 0x34d   :  { %3069 = vpow2.f32 %v2367_v27  ;;  %v1270_v27 = vld [vmem:[#allocation8 + $0xf0] sm:$0xff] }
 0x34e   :  { %3071 = vtanh.f32 %v977_v56  ;;  %v3647_v55 = vpack.c.bf16 %v1270_v27, %v1266_v25  ;;  %v1275_v56 = vld [vmem:[#allocation8 + $0x118] sm:$0xff] }
 0x34f   :  { %3073 = vpow2.f32 %v2368_v63  ;;  %v1279_v63 = vld [vmem:[#allocation8 + $0x138] sm:$0xff] }
 0x356   :  { %v3068_v2 = vpop.eup %3067 }
 0x357   :  { %v987_v14 = vadd.f32 1.0, %v3068_v2  ;;  %v3070_v16 = vpop.eup %3069  ;;  %v3651_v2 = vpack.c.bf16 %v1279_v63, %v1275_v56 }
 0x358   :  { %v988_v24 = vadd.f32 1.0, %v3070_v16  ;;  %v3072_v32 = vpop.eup %3071  ;;  %v1278_v16 = vld [vmem:[#allocation8 + $0x130] sm:$0xff] }
 0x359   :  { %3075 = vrcp.f32 %v987_v14  ;;  %v3074_v40 = vpop.eup %3073  ;;  %v1274_v14 = vld [vmem:[#allocation8 + $0x110] sm:$0xff] }
 0x35a   :  { %3077 = vrcp.f32 %v988_v24  ;;  %v989_v43 = vadd.f32 1.0, %v3074_v40  ;;  %v3653_v24 = vpack.c.bf16 %v1278_v16, %v1274_v14  ;;  %v1287_v40 = vld [vmem:[#allocation8 + $0x178] sm:$0xff] }
 0x35c   :  { %3079 = vrcp.f32 %v989_v43 }
 0x363   :  { %v3076_v42 = vpop.eup %3075 }
 0x364   :  { %v998_v30 = vmul.f32 %v3076_v42, %v3072_v32  ;;  %v3078_v35 = vpop.eup %3077  ;;  %v1283_v32 = vld [vmem:[#allocation8 + $0x158] sm:$0xff] }
 0x365   :  { %v997_v45 = vmul.f32 %v3078_v35, %v3524_v22  ;;  %v1243_v22 = vld [vmem:[#allocation8 + $0x18] sm:$0xff]  ;;  %v3657_v42 = vpack.c.bf16 %v1287_v40, %v1283_v32  ;;  %v1286_v35 = vld [vmem:[#allocation8 + $0x170] sm:$0xff] }
 0x366   :  { %v3080_v48 = vpop.eup %3079  ;;  %v3627_v59 = vpack.c.bf16 %v1247_v58, %v1243_v22  ;;  %v1294_v58 = vld [vmem:[#allocation8 + $0x1b0] sm:$0xff] }
 0x367   :  { %v3602_v47 = vadd.f32 %v998_v30, %v997_v45  ;;  %v1282_v30 = vld [vmem:[#allocation8 + $0x150] sm:$0xff]  ;;  %v1291_v45 = vld [vmem:[#allocation8 + $0x198] sm:$0xff] }
 0x368   :  { %2774 = vmatprep.subr.bf16.mxu1 %v3627_v59  ;;  %v3659_v43 = vpack.c.bf16 %v1286_v35, %v1282_v30 }
 0x369   :  { %3081 = vtanh.f32 %v3602_v47 }
 0x373   :  { %v3082_v51 = vpop.eup %3081 }
 0x374   :  { %v3605_v53 = vmul.f32 %v3082_v51, %v3080_v48  ;;  %v1295_v48 = vld [vmem:[#allocation8 + $0x1b8] sm:$0xff]  ;;  %v1290_v51 = vld [vmem:[#allocation8 + $0x190] sm:$0xff] }
 0x375   :  { %v3662_v22 = vpack.c.bf16 %v1295_v48, %v1291_v45  ;;  %v3665_v26 = vpack.c.bf16 %v1294_v58, %v1290_v51 }
 0x376   :  { %1133 = vmatmul.mubr.f32.vlgmr.msra.gmra.mrb[6].mxu0 %v3605_v53  ;;  %1204 = vmatmul.mubr.f32.vlgmr.msra.gmra.mrb[10].mxu1 %v3605_v53 }
 0x377   :  { %2744 = vmatpush1.bf16.msra.mxu0 %v3550_v7  ;;  %1368 = vmatprep.mubr.f32.mxu0 %v3238_v0 }
 0x378   :  { %2746 = vmatprep.subr.bf16.mxu0 %v3554_v23  ;;  %1439 = vmatprep.mubr.f32.mxu1 %v3238_v0 }
 0x379   :  { %2776 = vmatpush1.bf16.msra.mxu1 %v3629_v18 }
 0x37a   :  { %2778 = vmatprep.subr.bf16.mxu1 %v3633_v44 }
 0x37b   :  { %2748 = vmatpush1.bf16.msra.mxu0 %v3556_v34 }
 0x37c   :  { %2750 = vmatprep.subr.bf16.mxu0 %v3560_v46 }
 0x37d   :  { %2780 = vmatpush1.bf16.msra.mxu1 %v3635_v4 }
 0x37e   :  { %2782 = vmatprep.subr.bf16.mxu1 %v3639_v41 }
 0x37f   :  { %2752 = vmatpush1.bf16.msra.mxu0 %v3562_v38 }
 0x380   :  { %2754 = vmatprep.subr.bf16.mxu0 %v3566_v8 }
 0x381   :  { %2784 = vmatpush1.bf16.msra.mxu1 %v3641_v12 }
 0x382   :  { %2786 = vmatprep.subr.bf16.mxu1 %v3645_v21 }
 0x383   :  { %2756 = vmatpush1.bf16.msra.mxu0 %v3568_v49 }
 0x384   :  { %2758 = vmatprep.subr.bf16.mxu0 %v3572_v57 }
 0x385   :  { %2788 = vmatpush1.bf16.msra.mxu1 %v3647_v55 }
 0x386   :  { %2790 = vmatprep.subr.bf16.mxu1 %v3651_v2 }
 0x387   :  { %2760 = vmatpush1.bf16.msra.mxu0 %v3574_v60 }
 0x388   :  { %2762 = vmatprep.subr.bf16.mxu0 %v3578_v13 }
 0x389   :  { %2792 = vmatpush1.bf16.msra.mxu1 %v3653_v24 }
 0x38a   :  { %2794 = vmatprep.subr.bf16.mxu1 %v3657_v42 }
 0x38b   :  { %2764 = vmatpush1.bf16.msra.mxu0 %v3580_v31 }
 0x38c   :  { %2766 = vmatprep.subr.bf16.mxu0 %v3583_v52 }
 0x38d   :  { %2796 = vmatpush1.bf16.msra.mxu1 %v3659_v43 }
 0x38e   :  { %2798 = vmatprep.subr.bf16.mxu1 %v3662_v22 }
 0x38f   :  { %2768 = vmatpush1.bf16.msra.mxu0 %v3586_v19 }
 0x390   :  { %2770 = vmatprep.subr.bf16.mxu0 %v3589_v29 }
 0x391   :  { %2800 = vmatpush1.bf16.msra.mxu1 %v3665_v26 }
 0x392   :  { %2802 = vmatprep.subr.bf16.mxu1 %v3668_v39 }
 0x393   :  { %2772 = vmatpush1.bf16.msra.mxu0 %v3592_v54 }
 0x394   :  { %2806 = vmatprep.subr.bf16.mxu0 %v3548_v61 }
 0x395   :  { %2804 = vmatpush1.bf16.msra.mxu1 %v3671_v15 }
 0x396   :  { %2838 = vmatprep.subr.bf16.mxu1 %v3627_v59 }
 0x449   :  { %v1134_v33 = vpop.f32.mrb[6].mxu0  ;;  %v1205_v10 = vpop.f32.mrb[10].mxu1 }
 0x44a   :  { %v1210_v11 = vadd.f32 %v1134_v33, %v3469_v9  ;;  %v1136_v17 = vpop.f32.mrb[7].mxu0  ;;  %v1207_v20 = vpop.f32.mrb[11].mxu1  ;;  %v1212_v63 = vadd.f32 %v1205_v10, %v3473_v36 }
 0x44b   :  { %v1211_v25 = vadd.f32 %v1136_v17, %v3467_v6  ;;  %v1213_v14 = vadd.f32 %v1207_v20, %v3475_v37 }
 0x44c   :  { %v2369_v27 = vmul.f32 -1.442695, %v1210_v11  ;;  %v2371_v16 = vmul.f32 -1.442695, %v1212_v63 }
 0x44d   :  { %v2370_v56 = vmul.f32 -1.442695, %v1211_v25 }
 0x44e   :  { %3083 = vpow2.f32 %v2369_v27 }
 0x44f   :  { %3085 = vpow2.f32 %v2370_v56 }
 0x450   :  { %3087 = vtanh.f32 %v1213_v14 }
 0x451   :  { %3089 = vpow2.f32 %v2371_v16 }
 0x458   :  { %v3084_v32 = vpop.eup %3083 }
 0x459   :  { %v1223_v40 = vadd.f32 1.0, %v3084_v32  ;;  %v3086_v30 = vpop.eup %3085 }
 0x45a   :  { %v1224_v35 = vadd.f32 1.0, %v3086_v30  ;;  %v3088_v45 = vpop.eup %3087 }
 0x45b   :  { %3091 = vrcp.f32 %v1223_v40  ;;  %v3090_v48 = vpop.eup %3089 }
 0x45c   :  { %3093 = vrcp.f32 %v1224_v35  ;;  %v1225_v3 = vadd.f32 1.0, %v3090_v48 }
 0x45e   :  { %3095 = vrcp.f32 %v1225_v3 }
 0x465   :  { %v3092_v51 = vpop.eup %3091 }
 0x466   :  { %v1234_v58 = vmul.f32 %v3092_v51, %v3088_v45  ;;  %v3094_v1 = vpop.eup %3093 }
 0x467   :  { %v1233_v50 = vmul.f32 %v3094_v1, %v3602_v47 }
 0x468   :  { %v3096_v33 = vpop.eup %3095 }
 0x469   :  { %v3681_v62 = vadd.f32 %v1234_v58, %v1233_v50 }
 0x46b   :  { %3097 = vtanh.f32 %v3681_v62 }
 0x475   :  { %v3098_v10 = vpop.eup %3097 }
 0x476   :  { %v3684_v11 = vmul.f32 %v3098_v10, %v3096_v33 }
 0x478   :  { %1369 = vmatmul.mubr.f32.vlgmr.msra.gmra.mrb[8].mxu0 %v3684_v11  ;;  %1440 = vmatmul.mubr.f32.vlgmr.msra.gmra.mrb[12].mxu1 %v3684_v11 }
 0x479   :  { %2808 = vmatpush1.bf16.msra.mxu0 %v3550_v7  ;;  %2840 = vmatpush1.bf16.msra.mxu1 %v3629_v18 }
 0x47a   :  { %2810 = vmatprep.subr.bf16.mxu0 %v3554_v23  ;;  %2842 = vmatprep.subr.bf16.mxu1 %v3633_v44 }
 0x47b   :  { %1604 = vmatprep.mubr.f32.mxu0 %v3238_v0  ;;  %1675 = vmatprep.mubr.f32.mxu1 %v3238_v0 }
 0x47d   :  { %2812 = vmatpush1.bf16.msra.mxu0 %v3556_v34  ;;  %2844 = vmatpush1.bf16.msra.mxu1 %v3635_v4 }
 0x47e   :  { %2814 = vmatprep.subr.bf16.mxu0 %v3560_v46  ;;  %2846 = vmatprep.subr.bf16.mxu1 %v3639_v41 }
 0x481   :  { %2816 = vmatpush1.bf16.msra.mxu0 %v3562_v38  ;;  %2848 = vmatpush1.bf16.msra.mxu1 %v3641_v12 }
 0x482   :  { %2818 = vmatprep.subr.bf16.mxu0 %v3566_v8  ;;  %2850 = vmatprep.subr.bf16.mxu1 %v3645_v21 }
 0x485   :  { %2820 = vmatpush1.bf16.msra.mxu0 %v3568_v49  ;;  %2852 = vmatpush1.bf16.msra.mxu1 %v3647_v55 }
 0x486   :  { %2822 = vmatprep.subr.bf16.mxu0 %v3572_v57  ;;  %2854 = vmatprep.subr.bf16.mxu1 %v3651_v2 }
 0x489   :  { %2824 = vmatpush1.bf16.msra.mxu0 %v3574_v60  ;;  %2856 = vmatpush1.bf16.msra.mxu1 %v3653_v24 }
 0x48a   :  { %2826 = vmatprep.subr.bf16.mxu0 %v3578_v13  ;;  %2858 = vmatprep.subr.bf16.mxu1 %v3657_v42 }
 0x48d   :  { %2828 = vmatpush1.bf16.msra.mxu0 %v3580_v31  ;;  %2860 = vmatpush1.bf16.msra.mxu1 %v3659_v43 }
 0x48e   :  { %2830 = vmatprep.subr.bf16.mxu0 %v3583_v52  ;;  %2862 = vmatprep.subr.bf16.mxu1 %v3662_v22 }
 0x491   :  { %2832 = vmatpush1.bf16.msra.mxu0 %v3586_v19  ;;  %2864 = vmatpush1.bf16.msra.mxu1 %v3665_v26 }
 0x492   :  { %2834 = vmatprep.subr.bf16.mxu0 %v3589_v29  ;;  %2866 = vmatprep.subr.bf16.mxu1 %v3668_v39 }
 0x495   :  { %2836 = vmatpush1.bf16.msra.mxu0 %v3592_v54  ;;  %2868 = vmatpush1.bf16.msra.mxu1 %v3671_v15 }
 0x496   :  { %2870 = vmatprep.subr.bf16.mxu0 %v3548_v61  ;;  %2902 = vmatprep.subr.bf16.mxu1 %v3627_v59 }
 0x54b   :  { %v1370_v47 = vpop.f32.mrb[8].mxu0  ;;  %v1441_v17 = vpop.f32.mrb[12].mxu1 }
 0x54c   :  { %v1446_v20 = vadd.f32 %v1370_v47, %v3469_v9  ;;  %v1372_v25 = vpop.f32.mrb[9].mxu0  ;;  %v1443_v27 = vpop.f32.mrb[13].mxu1  ;;  %v1448_v16 = vadd.f32 %v1441_v17, %v3473_v36 }
 0x54d   :  { %v1447_v56 = vadd.f32 %v1372_v25, %v3467_v6  ;;  %v1449_v32 = vadd.f32 %v1443_v27, %v3475_v37 }
 0x54e   :  { %v2372_v63 = vmul.f32 -1.442695, %v1446_v20  ;;  %v2374_v40 = vmul.f32 -1.442695, %v1448_v16 }
 0x54f   :  { %v2373_v14 = vmul.f32 -1.442695, %v1447_v56 }
 0x550   :  { %3099 = vpow2.f32 %v2372_v63 }
 0x551   :  { %3101 = vpow2.f32 %v2373_v14 }
 0x552   :  { %3103 = vtanh.f32 %v1449_v32 }
 0x553   :  { %3105 = vpow2.f32 %v2374_v40 }
 0x55a   :  { %v3100_v61 = vpop.eup %3099 }
 0x55b   :  { %v1459_v30 = vadd.f32 1.0, %v3100_v61  ;;  %v3102_v35 = vpop.eup %3101 }
 0x55c   :  { %v1460_v45 = vadd.f32 1.0, %v3102_v35  ;;  %v3104_v48 = vpop.eup %3103 }
 0x55d   :  { %3107 = vrcp.f32 %v1459_v30  ;;  %v3106_v51 = vpop.eup %3105  ;;  %v1968_v30 = vld [vmem:[#allocation8 + $0xa0] sm:$0xff] }
 0x55e   :  { %3109 = vrcp.f32 %v1460_v45  ;;  %v1461_v50 = vadd.f32 1.0, %v3106_v51  ;;  %v1973_v45 = vld [vmem:[#allocation8 + $0xc8] sm:$0xff] }
 0x560   :  { %3111 = vrcp.f32 %v1461_v50  ;;  %v1981_v50 = vld [vmem:[#allocation8 + $0x108] sm:$0xff] }
 0x567   :  { %v3108_v58 = vpop.eup %3107 }
 0x568   :  { %v1470_v1 = vmul.f32 %v3108_v58, %v3104_v48  ;;  %v3110_v3 = vpop.eup %3109  ;;  %v1977_v48 = vld [vmem:[#allocation8 + $0xe8] sm:$0xff]  ;;  %v1972_v58 = vld [vmem:[#allocation8 + $0xc0] sm:$0xff] }
 0x569   :  { %v1469_v33 = vmul.f32 %v3110_v3, %v3681_v62  ;;  %v2945_v51 = vpack.c.bf16 %v1977_v48, %v1973_v45 }
 0x56a   :  { %v3112_v47 = vpop.eup %3111 }
 0x56b   :  { %v3727_v10 = vadd.f32 %v1470_v1, %v1469_v33  ;;  %v1976_v1 = vld [vmem:[#allocation8 + $0xe0] sm:$0xff]  ;;  %v1985_v33 = vld [vmem:[#allocation8 + $0x128] sm:$0xff] }
 0x56c   :  { %v2947_v3 = vpack.c.bf16 %v1976_v1, %v1972_v58  ;;  %v2196_v58 = vld [vmem:[%s3891_s4 + $0x10] sm:$0xff]  ;;  %v2197_v1 = vld [vmem:[%s3891_s4 + $0x18] sm:$0xff] }
 0x56d   :  { %3113 = vtanh.f32 %v3727_v10 }
 0x577   :  { %v3114_v17 = vpop.eup %3113 }
 0x578   :  { %v3730_v20 = vmul.f32 %v3114_v17, %v3112_v47  ;;  %v1980_v47 = vld [vmem:[#allocation8 + $0x100] sm:$0xff] }
 0x579   :  { %v1984_v17 = vld [vmem:[#allocation8 + $0x120] sm:$0xff] }
 0x57a   :  { %1605 = vmatmul.mubr.f32.vlgmr.msra.gmra.mrb[10].mxu0 %v3730_v20  ;;  %1676 = vmatmul.mubr.f32.vlgmr.msra.gmra.mrb[14].mxu1 %v3730_v20 }
 0x57b   :  { %2872 = vmatpush1.bf16.msra.mxu0 %v3550_v7  ;;  %2904 = vmatpush1.bf16.msra.mxu1 %v3629_v18 }
 0x57c   :  { %2874 = vmatprep.subr.bf16.mxu0 %v3554_v23  ;;  %2906 = vmatprep.subr.bf16.mxu1 %v3633_v44 }
 0x57d   :  { %1840 = vmatprep.mubr.f32.mxu0 %v3238_v0  ;;  %1911 = vmatprep.mubr.f32.mxu1 %v3238_v0 }
 0x57f   :  { %2876 = vmatpush1.bf16.msra.mxu0 %v3556_v34  ;;  %2908 = vmatpush1.bf16.msra.mxu1 %v3635_v4 }
 0x580   :  { %2878 = vmatprep.subr.bf16.mxu0 %v3560_v46  ;;  %2910 = vmatprep.subr.bf16.mxu1 %v3639_v41 }
 0x583   :  { %2880 = vmatpush1.bf16.msra.mxu0 %v3562_v38  ;;  %2912 = vmatpush1.bf16.msra.mxu1 %v3641_v12 }
 0x584   :  { %2882 = vmatprep.subr.bf16.mxu0 %v3566_v8  ;;  %2914 = vmatprep.subr.bf16.mxu1 %v3645_v21 }
 0x587   :  { %2884 = vmatpush1.bf16.msra.mxu0 %v3568_v49  ;;  %2916 = vmatpush1.bf16.msra.mxu1 %v3647_v55 }
 0x588   :  { %2886 = vmatprep.subr.bf16.mxu0 %v3572_v57  ;;  %2918 = vmatprep.subr.bf16.mxu1 %v3651_v2 }
 0x58b   :  { %2888 = vmatpush1.bf16.msra.mxu0 %v3574_v60  ;;  %2920 = vmatpush1.bf16.msra.mxu1 %v3653_v24 }
 0x58c   :  { %2890 = vmatprep.subr.bf16.mxu0 %v3578_v13  ;;  %2922 = vmatprep.subr.bf16.mxu1 %v3657_v42 }
 0x58f   :  { %2892 = vmatpush1.bf16.msra.mxu0 %v3580_v31  ;;  %2924 = vmatpush1.bf16.msra.mxu1 %v3659_v43 }
 0x590   :  { %2894 = vmatprep.subr.bf16.mxu0 %v3583_v52  ;;  %2926 = vmatprep.subr.bf16.mxu1 %v3662_v22 }
 0x593   :  { %2896 = vmatpush1.bf16.msra.mxu0 %v3586_v19  ;;  %2928 = vmatpush1.bf16.msra.mxu1 %v3665_v26 }
 0x594   :  { %2898 = vmatprep.subr.bf16.mxu0 %v3589_v29  ;;  %2930 = vmatprep.subr.bf16.mxu1 %v3668_v39 }
 0x597   :  { %2900 = vmatpush1.bf16.msra.mxu0 %v3592_v54  ;;  %2932 = vmatpush1.bf16.msra.mxu1 %v3671_v15 }
 0x598   :  { %2966 = vmatprep.subr.bf16.mxu1 %v3627_v59 }
 0x64d   :  { %v1606_v7 = vpop.f32.mrb[10].mxu0  ;;  %v1677_v23 = vpop.f32.mrb[14].mxu1 }
 0x64e   :  { %v1682_v34 = vadd.f32 %v1606_v7, %v3469_v9  ;;  %v1608_v46 = vpop.f32.mrb[11].mxu0  ;;  %v1679_v38 = vpop.f32.mrb[15].mxu1  ;;  %v1684_v60 = vadd.f32 %v1677_v23, %v3473_v36  ;;  %v2951_v7 = vpack.c.bf16 %v1984_v17, %v1980_v47  ;;  %v1989_v23 = vld [vmem:[#allocation8 + $0x148] sm:$0xff]  ;;  %v2199_v47 = vld [vmem:[%s3891_s4 + $0x28] sm:$0xff] }
 0x64f   :  { %v1683_v8 = vadd.f32 %v1608_v46, %v3467_v6  ;;  %v1685_v13 = vadd.f32 %v1679_v38, %v3475_v37  ;;  %v1988_v38 = vld [vmem:[#allocation8 + $0x140] sm:$0xff] }
 0x650   :  { %v2375_v49 = vmul.f32 -1.442695, %v1682_v34  ;;  %v2377_v31 = vmul.f32 -1.442695, %v1684_v60  ;;  %v1993_v34 = vld [vmem:[#allocation8 + $0x168] sm:$0xff] }
 0x651   :  { %v2376_v57 = vmul.f32 -1.442695, %v1683_v8  ;;  %v2953_v46 = vpack.c.bf16 %v1993_v34, %v1989_v23  ;;  %v1992_v8 = vld [vmem:[#allocation8 + $0x160] sm:$0xff]  ;;  %v2001_v60 = vld [vmem:[#allocation8 + $0x1a8] sm:$0xff] }
 0x652   :  { %3115 = vpow2.f32 %v2375_v49  ;;  %v2955_v49 = vpack.c.bf16 %v1992_v8, %v1988_v38  ;;  %v2201_v23 = vld [vmem:[%s3891_s4 + $0x38] sm:$0xff]  ;;  %v2204_v8 = vld [vmem:[%s3891_s4 + $0x50] sm:$0xff] }
 0x653   :  { %3117 = vpow2.f32 %v2376_v57  ;;  %v1997_v57 = vld [vmem:[#allocation8 + $0x188] sm:$0xff] }
 0x654   :  { %3119 = vtanh.f32 %v1685_v13  ;;  %v1996_v13 = vld [vmem:[#allocation8 + $0x180] sm:$0xff] }
 0x655   :  { %3121 = vpow2.f32 %v2377_v31  ;;  %v2957_v31 = vpack.c.bf16 %v2001_v60, %v1997_v57  ;;  %v2206_v60 = vld [vmem:[%s3891_s4 + $0x60] sm:$0xff] }
 0x65c   :  { %v3116_v52 = vpop.eup %3115 }
 0x65d   :  { %v1695_v19 = vadd.f32 1.0, %v3116_v52  ;;  %v3118_v29 = vpop.eup %3117  ;;  %v2000_v52 = vld [vmem:[#allocation8 + $0x1a0] sm:$0xff] }
 0x65e   :  { %v1696_v54 = vadd.f32 1.0, %v3118_v29  ;;  %v3120_v59 = vpop.eup %3119  ;;  %v2009_v29 = vld [vmem:[#allocation8 + $0x1e8] sm:$0xff] }
 0x65f   :  { %3123 = vrcp.f32 %v1695_v19  ;;  %v3122_v62 = vpop.eup %3121  ;;  %v2005_v19 = vld [vmem:[#allocation8 + $0x1c8] sm:$0xff] }
 0x660   :  { %3125 = vrcp.f32 %v1696_v54  ;;  %v1697_v63 = vadd.f32 1.0, %v3122_v62  ;;  %v2959_v54 = vpack.c.bf16 %v2000_v52, %v1996_v13  ;;  %v2004_v62 = vld [vmem:[#allocation8 + $0x1c0] sm:$0xff]  ;;  %v2207_v13 = vld [vmem:[%s3891_s4 + $0x68] sm:$0xff] }
 0x661   :  { %v2208_v52 = vld [vmem:[%s3891_s4 + $0x70] sm:$0xff] }
 0x662   :  { %3127 = vrcp.f32 %v1697_v63 }
 0x669   :  { %v3124_v25 = vpop.eup %3123 }
 0x66a   :  { %v1706_v27 = vmul.f32 %v3124_v25, %v3120_v59  ;;  %v3126_v56 = vpop.eup %3125  ;;  %v2961_v59 = vpack.c.bf16 %v2009_v29, %v2005_v19  ;;  %v2008_v25 = vld [vmem:[#allocation8 + $0x1e0] sm:$0xff]  ;;  %v2209_v19 = vld [vmem:[%s3891_s4 + $0x78] sm:$0xff] }
 0x66b   :  { %v1705_v14 = vmul.f32 %v3126_v56, %v3727_v10  ;;  %v2949_v10 = vpack.c.bf16 %v1985_v33, %v1981_v50  ;;  %v2195_v56 = vld [vmem:[%s3891_s4 + $0x8] sm:$0xff]  ;;  %v2963_v63 = vpack.c.bf16 %v2008_v25, %v2004_v62  ;;  %v3025_v29 = vpack.c.bf16 %v2209_v19, %v2208_v52 }
 0x66c   :  { %v3128_v32 = vpop.eup %3127 }
 0x66d   :  { %v3772_v16 = vadd.f32 %v1706_v27, %v1705_v14  ;;  %v2194_v27 = vld [vmem:[%s3891_s4] sm:$0xff] }
 0x66e   :  { %v2997_v14 = vpack.c.bf16 %v2195_v56, %v2194_v27 }
 0x66f   :  { %3129 = vtanh.f32 %v3772_v16 }
 0x679   :  { %v3130_v40 = vpop.eup %3129 }
 0x67a   :  { %v3775_v61 = vmul.f32 %v3130_v40, %v3128_v32 }
 0x67c   :  { %1841 = vmatmul.mubr.f32.vlgmr.msra.gmra.mrb[12].mxu0 %v3775_v61  ;;  %1912 = vmatmul.mubr.f32.vlgmr.msra.gmra.mrb[16].mxu1 %v3775_v61 }
 0x67d   :  { %2968 = vmatpush1.bf16.msra.mxu1 %v3629_v18  ;;  %2076 = vmatprep.mubr.f32.mxu0 %v3238_v0  ;;  %v1953_v18 = vld [vmem:[#allocation8 + $0x28] sm:$0xff] }
 0x67e   :  { %2970 = vmatprep.subr.bf16.mxu1 %v3633_v44  ;;  %2147 = vmatprep.mubr.f32.mxu1 %v3238_v0  ;;  %v1949_v0 = vld [vmem:[#allocation8 + $0x8] sm:$0xff] }
 0x67f   :  { %v2933_v44 = vpack.c.bf16 %v1953_v18, %v1949_v0 }
 0x681   :  { %2972 = vmatpush1.bf16.msra.mxu1 %v3635_v4  ;;  %v1948_v4 = vld [vmem:[#allocation8] sm:$0xff]  ;;  %2934 = vmatprep.subr.bf16.mxu0 %v2933_v44 }
 0x682   :  { %2974 = vmatprep.subr.bf16.mxu1 %v3639_v41  ;;  %v1952_v41 = vld [vmem:[#allocation8 + $0x20] sm:$0xff] }
 0x685   :  { %2976 = vmatpush1.bf16.msra.mxu1 %v3641_v12  ;;  %v2935_v12 = vpack.c.bf16 %v1952_v41, %v1948_v4 }
 0x686   :  { %2978 = vmatprep.subr.bf16.mxu1 %v3645_v21  ;;  %v1957_v21 = vld [vmem:[#allocation8 + $0x48] sm:$0xff] }
 0x687   :  { %2936 = vmatpush1.bf16.msra.mxu0 %v2935_v12 }
 0x689   :  { %2980 = vmatpush1.bf16.msra.mxu1 %v3647_v55  ;;  %v1961_v55 = vld [vmem:[#allocation8 + $0x68] sm:$0xff] }
 0x68a   :  { %2982 = vmatprep.subr.bf16.mxu1 %v3651_v2  ;;  %v2937_v2 = vpack.c.bf16 %v1961_v55, %v1957_v21 }
 0x68c   :  { %2938 = vmatprep.subr.bf16.mxu0 %v2937_v2 }
 0x68d   :  { %2984 = vmatpush1.bf16.msra.mxu1 %v3653_v24  ;;  %v1956_v24 = vld [vmem:[#allocation8 + $0x40] sm:$0xff] }
 0x68e   :  { %2986 = vmatprep.subr.bf16.mxu1 %v3657_v42  ;;  %v1960_v42 = vld [vmem:[#allocation8 + $0x60] sm:$0xff] }
 0x691   :  { %2988 = vmatpush1.bf16.msra.mxu1 %v3659_v43  ;;  %v2939_v43 = vpack.c.bf16 %v1960_v42, %v1956_v24 }
 0x692   :  { %2990 = vmatprep.subr.bf16.mxu1 %v3662_v22  ;;  %v1965_v22 = vld [vmem:[#allocation8 + $0x88] sm:$0xff] }
 0x693   :  { %2940 = vmatpush1.bf16.msra.mxu0 %v2939_v43 }
 0x695   :  { %2992 = vmatpush1.bf16.msra.mxu1 %v3665_v26  ;;  %v1969_v26 = vld [vmem:[#allocation8 + $0xa8] sm:$0xff] }
 0x696   :  { %2994 = vmatprep.subr.bf16.mxu1 %v3668_v39  ;;  %v2941_v39 = vpack.c.bf16 %v1969_v26, %v1965_v22 }
 0x698   :  { %2942 = vmatprep.subr.bf16.mxu0 %v2941_v39 }
 0x699   :  { %2996 = vmatpush1.bf16.msra.mxu1 %v3671_v15  ;;  %v1964_v15 = vld [vmem:[#allocation8 + $0x80] sm:$0xff] }
 0x69a   :  { %v2943_v35 = vpack.c.bf16 %v1968_v30, %v1964_v15 }
 0x69c   :  { %2944 = vmatpush1.bf16.msra.mxu0 %v2943_v35 }
 0x69d   :  { %2946 = vmatprep.subr.bf16.mxu0 %v2945_v51 }
 0x6a0   :  { %2948 = vmatpush1.bf16.msra.mxu0 %v2947_v3 }
 0x6a1   :  { %2950 = vmatprep.subr.bf16.mxu0 %v2949_v10  ;;  %v3001_v10 = vpack.c.bf16 %v2197_v1, %v2196_v58 }
 0x6a4   :  { %2952 = vmatpush1.bf16.msra.mxu0 %v2951_v7  ;;  %v2200_v7 = vld [vmem:[%s3891_s4 + $0x30] sm:$0xff] }
 0x6a5   :  { %2954 = vmatprep.subr.bf16.mxu0 %v2953_v46  ;;  %v3009_v34 = vpack.c.bf16 %v2201_v23, %v2200_v7  ;;  %v2202_v46 = vld [vmem:[%s3891_s4 + $0x40] sm:$0xff] }
 0x6a8   :  { %2956 = vmatpush1.bf16.msra.mxu0 %v2955_v49  ;;  %v2205_v49 = vld [vmem:[%s3891_s4 + $0x58] sm:$0xff] }
 0x6a9   :  { %2958 = vmatprep.subr.bf16.mxu0 %v2957_v31  ;;  %v3017_v57 = vpack.c.bf16 %v2205_v49, %v2204_v8  ;;  %v3021_v31 = vpack.c.bf16 %v2207_v13, %v2206_v60 }
 0x6ac   :  { %2960 = vmatpush1.bf16.msra.mxu0 %v2959_v54 }
 0x6ad   :  { %2962 = vmatprep.subr.bf16.mxu0 %v2961_v59 }
 0x6b0   :  { %2964 = vmatpush1.bf16.msra.mxu0 %v2963_v63 }
 0x6b1   :  { %2998 = vmatprep.subr.bf16.mxu0 %v2997_v14 }
 0x74f   :  { %v1842_v32 = vpop.f32.mrb[12].mxu0  ;;  %v1913_v40 = vpop.f32.mrb[16].mxu1 }
 0x750   :  { %v1918_v0 = vadd.f32 %v1842_v32, %v3469_v9  ;;  %v1844_v18 = vpop.f32.mrb[13].mxu0  ;;  %v1915_v44 = vpop.f32.mrb[17].mxu1  ;;  %v1920_v21 = vadd.f32 %v1913_v40, %v3473_v36 }
 0x751   :  { %v1919_v4 = vadd.f32 %v1844_v18, %v3467_v6  ;;  %v1921_v55 = vadd.f32 %v1915_v44, %v3475_v37 }
 0x752   :  { %v2378_v41 = vmul.f32 -1.442695, %v1918_v0  ;;  %v2380_v2 = vmul.f32 -1.442695, %v1920_v21 }
 0x753   :  { %v2379_v12 = vmul.f32 -1.442695, %v1919_v4 }
 0x754   :  { %3131 = vpow2.f32 %v2378_v41  ;;  %v2384_v41 = vld [vmem:[#allocation10] ss:$0 sm:$0xff] }
 0x755   :  { %3133 = vpow2.f32 %v2379_v12 }
 0x756   :  { %3135 = vtanh.f32 %v1921_v55 }
 0x757   :  { %3137 = vpow2.f32 %v2380_v2 }
 0x75e   :  { %v3132_v24 = vpop.eup %3131 }
 0x75f   :  { %v1931_v42 = vadd.f32 1.0, %v3132_v24  ;;  %v3134_v43 = vpop.eup %3133 }
 0x760   :  { %v1932_v22 = vadd.f32 1.0, %v3134_v43  ;;  %v3136_v26 = vpop.eup %3135 }
 0x761   :  { %3139 = vrcp.f32 %v1931_v42  ;;  %v3138_v39 = vpop.eup %3137 }
 0x762   :  { %3141 = vrcp.f32 %v1932_v22  ;;  %v1933_v45 = vadd.f32 1.0, %v3138_v39 }
 0x764   :  { %3143 = vrcp.f32 %v1933_v45 }
 0x76b   :  { %v3140_v15 = vpop.eup %3139 }
 0x76c   :  { %v1942_v30 = vmul.f32 %v3140_v15, %v3136_v26  ;;  %v3142_v35 = vpop.eup %3141 }
 0x76d   :  { %v1941_v48 = vmul.f32 %v3142_v35, %v3772_v16  ;;  %v2198_v16 = vld [vmem:[%s3891_s4 + $0x20] sm:$0xff] }
 0x76e   :  { %v3144_v3 = vpop.eup %3143  ;;  %v3005_v17 = vpack.c.bf16 %v2199_v47, %v2198_v16 }
 0x76f   :  { %v3807_v51 = vadd.f32 %v1942_v30, %v1941_v48 }
 0x771   :  { %3145 = vtanh.f32 %v3807_v51 }
 0x77b   :  { %v3146_v50 = vpop.eup %3145 }
 0x77c   :  { %v1945_v33 = vmul.f32 %v3146_v50, %v3144_v3 }
 0x77e   :  { %2077 = vmatmul.mubr.f32.vlgmr.msra.gmra.mrb[14].mxu0 %v1945_v33  ;;  %2148 = vmatmul.mubr.f32.vlgmr.msra.gmra.mrb[18].mxu1 %v1945_v33 }
 0x77f   :  { %3000 = vmatpush3.bf16.msra.mxu0 %v2997_v14  ;;  %2441 = vmatprep.mubr.f32.mxu0 %v3482_v5  ;;  %v2203_v5 = vld [vmem:[%s3891_s4 + $0x48] sm:$0xff] }
 0x780   :  { %3002 = vmatprep.subr.bf16.mxu0 %v3001_v10  ;;  %v3013_v38 = vpack.c.bf16 %v2203_v5, %v2202_v46 }
 0x783   :  { %3004 = vmatpush3.bf16.msra.mxu0 %v3001_v10 }
 0x784   :  { %3006 = vmatprep.subr.bf16.mxu0 %v3005_v17 }
 0x787   :  { %3008 = vmatpush3.bf16.msra.mxu0 %v3005_v17 }
 0x788   :  { %3010 = vmatprep.subr.bf16.mxu0 %v3009_v34 }
 0x78b   :  { %3012 = vmatpush3.bf16.msra.mxu0 %v3009_v34 }
 0x78c   :  { %3014 = vmatprep.subr.bf16.mxu0 %v3013_v38 }
 0x78f   :  { %3016 = vmatpush3.bf16.msra.mxu0 %v3013_v38 }
 0x790   :  { %3018 = vmatprep.subr.bf16.mxu0 %v3017_v57 }
 0x793   :  { %3020 = vmatpush3.bf16.msra.mxu0 %v3017_v57 }
 0x794   :  { %3022 = vmatprep.subr.bf16.mxu0 %v3021_v31 }
 0x797   :  { %3024 = vmatpush3.bf16.msra.mxu0 %v3021_v31 }
 0x798   :  { %3026 = vmatprep.subr.bf16.mxu0 %v3025_v29 }
 0x79b   :  { %3028 = vmatpush3.bf16.msra.mxu0 %v3025_v29 }
 0x79e   :  { %2442 = vmatmul.mubr.f32.vlgmr.msra.gmra.mrb[16].mxu0 %v3527_v28 }
 0x79f   :  { %2444 = vmatprep.mubr.f32.mxu0 %v3605_v53 }
 0x7a2   :  { %2445 = vmatmul.mubr.f32.gmra.mrb[18].mxu0 %v3684_v11 }
 0x7a3   :  { %2447 = vmatprep.mubr.f32.mxu0 %v3730_v20 }
 0x7a6   :  { %2448 = vmatmul.mubr.f32.gmra.mrb[20].mxu0 %v3775_v61 }
 0x7a7   :  { %2450 = vmatprep.mubr.f32.mxu0 %v1945_v33 }
 0x851   :  { %v2078_v54 = vpop.f32.mrb[14].mxu0  ;;  %v2149_v59 = vpop.f32.mrb[18].mxu1 }
 0x852   :  { %v2154_v62 = vadd.f32 %v2078_v54, %v3469_v9  ;;  %v2080_v25 = vpop.f32.mrb[15].mxu0  ;;  %v2151_v27 = vpop.f32.mrb[19].mxu1  ;;  %v2156_v28 = vadd.f32 %v2149_v59, %v3473_v36 }
 0x853   :  { %v2155_v56 = vadd.f32 %v2080_v25, %v3467_v6  ;;  %v2157_v53 = vadd.f32 %v2151_v27, %v3475_v37 }
 0x854   :  { %v2381_v63 = vmul.f32 -1.442695, %v2154_v62  ;;  %v2383_v11 = vmul.f32 -1.442695, %v2156_v28 }
 0x855   :  { %v2382_v14 = vmul.f32 -1.442695, %v2155_v56 }
 0x856   :  { %3147 = vpow2.f32 %v2381_v63 }
 0x857   :  { %3149 = vpow2.f32 %v2382_v14 }
 0x858   :  { %3151 = vtanh.f32 %v2157_v53 }
 0x859   :  { %3153 = vpow2.f32 %v2383_v11 }
 0x860   :  { %v3148_v20 = vpop.eup %3147 }
 0x861   :  { %v2167_v61 = vadd.f32 1.0, %v3148_v20  ;;  %v3150_v32 = vpop.eup %3149 }
 0x862   :  { %v2168_v9 = vadd.f32 1.0, %v3150_v32  ;;  %v3152_v40 = vpop.eup %3151 }
 0x863   :  { %3155 = vrcp.f32 %v2167_v61  ;;  %v3154_v0 = vpop.eup %3153 }
 0x864   :  { %3157 = vrcp.f32 %v2168_v9  ;;  %v2169_v4 = vadd.f32 1.0, %v3154_v0 }
 0x866   :  { %3159 = vrcp.f32 %v2169_v4 }
 0x86d   :  { %v3156_v6 = vpop.eup %3155 }
 0x86e   :  { %v2178_v18 = vmul.f32 %v3156_v6, %v3152_v40  ;;  %v3158_v44 = vpop.eup %3157 }
 0x86f   :  { %v2177_v36 = vmul.f32 %v3158_v44, %v3807_v51 }
 0x870   :  { %v3160_v35 = vpop.eup %3159 }
 0x871   :  { %v2443_v12 = vpop.f32.mrb[16].mxu0  ;;  %v2179_v37 = vadd.f32 %v2178_v18, %v2177_v36 }
 0x872   :  { %v2289_v21 = vadd.f32 %v2443_v12, %v2384_v41  ;;  %v2283_v55 = vpop.f32.mrb[17].mxu0 }
 0x873   :  { %v2284_v2 = vadd.f32 %v2384_v41, %v2283_v55  ;;  %3161 = vtanh.f32 %v2179_v37 }
 0x874   :  { %2323 = vst [vmem:[%s3893_s6 + $0x8] sm:$0xff] %v2289_v21 }
 0x875   :  { %2322 = vst [vmem:[%s3893_s6] sm:$0xff] %v2284_v2  ;;  %v2446_v24 = vpop.f32.mrb[18].mxu0 }
 0x876   :  { %v2299_v42 = vadd.f32 %v2446_v24, %v2384_v41  ;;  %v2293_v43 = vpop.f32.mrb[19].mxu0 }
 0x877   :  { %v2294_v22 = vadd.f32 %v2384_v41, %v2293_v43 }
 0x878   :  { %2325 = vst [vmem:[%s3893_s6 + $0x18] sm:$0xff] %v2299_v42 }
 0x879   :  { %2324 = vst [vmem:[%s3893_s6 + $0x10] sm:$0xff] %v2294_v22  ;;  %v2449_v26 = vpop.f32.mrb[20].mxu0 }
 0x87a   :  { %v2309_v39 = vadd.f32 %v2449_v26, %v2384_v41  ;;  %v2303_v15 = vpop.f32.mrb[21].mxu0 }
 0x87b   :  { %v2304_v30 = vadd.f32 %v2384_v41, %v2303_v15 }
 0x87c   :  { %2327 = vst [vmem:[%s3893_s6 + $0x28] sm:$0xff] %v2309_v39 }
 0x87d   :  { %2326 = vst [vmem:[%s3893_s6 + $0x20] sm:$0xff] %v2304_v30  ;;  %v3162_v45 = vpop.eup %3161 }
 0x87e   :  { %v2181_v48 = vmul.f32 %v3162_v45, %v3160_v35 }
 0x880   :  { %2451 = vmatmul.mubr.f32.gmra.mrb[22].mxu0 %v2181_v48 }
 0x953   :  { %v2452_v51 = vpop.f32.mrb[22].mxu0 }
 0x954   :  { %v2319_v58 = vadd.f32 %v2452_v51, %v2384_v41  ;;  %v2313_v1 = vpop.f32.mrb[23].mxu0 }
 0x955   :  { %v2314_v3 = vadd.f32 %v2384_v41, %v2313_v1 }
 0x956   :  { %2329 = vst [vmem:[%s3893_s6 + $0x38] sm:$0xff] %v2319_v58 }
 0x957   :  { %2328 = vst [vmem:[%s3893_s6 + $0x30] sm:$0xff] %v2314_v3 }
 0x958   :  { %2348 = vsyncpa [#allocation7], 1 }
 0x959   :  { %2349 = vsyncpa [#allocation9], 1 }

</bundles_post_ra>
